<compile_context>
chip_gen: v6e
topology: v6e:2x2x1
jax: 0.10.0
libtpu: 0.0.40
codegen_flags: <defaults>
</compile_context>

<pallas_src>
import functools

import jax
import jax.numpy as jnp
from jax.experimental import pallas as pl
from jax.experimental.pallas import tpu as pltpu


def _conv1d_relu_bn_kernel(x_ref, w_ref, bias_ref, scale_ref, shift_ref, o_ref,
                           *, K, dilation, block_batch):
    """One batch tile.

    x_ref:     (Bt, C_in, L_pad)   input tile, native dtype (lane axis = L)
    w_ref:     (K, C_out, C_in)    conv weight, tap-major
    bias_ref:  (C_out, 1)          conv bias (zeros when bias=False)
    scale_ref: (C_out, 1)          folded BN scale = gamma / sqrt(var + eps)
    shift_ref: (C_out, 1)          folded BN shift = beta - mean * scale
    o_ref:     (Bt, C_out, L_out)  output tile
    """
    C_out, L_out = o_ref.shape[1], o_ref.shape[2]
    bias = bias_ref[...]
    scale = scale_ref[...]
    shift = shift_ref[...]
    # Static unroll over the (small) batch tile: each row is a well-shaped
    # (C_out, C_in) @ (C_in, L_out) MXU matmul with L on lanes, so no transposes
    # or batched-einsum relayouts are needed inside the kernel.
    for b in range(block_batch):
        xb = x_ref[b]                                      # (C_in, L_pad)
        acc = jnp.zeros((C_out, L_out), jnp.float32)
        for k in range(K):                                 # static unroll over taps
            off = k * dilation
            acc = acc + jnp.dot(w_ref[k], xb[:, off:off + L_out],
                                preferred_element_type=jnp.float32)
        acc = jnp.maximum(acc + bias, 0.0)                 # conv bias + ReLU
        o_ref[b] = (acc * scale + shift).astype(o_ref.dtype)   # folded BatchNorm


def _pick_block_batch(B, C_in, C_out, L_pad, L_out, itemsize,
                      vmem_budget_bytes=4 << 20):
    """Largest batch tile (<= 8, divides B) whose double-buffered in+out blocks
    stay within a small VMEM budget (v5e-safe)."""
    best = 1
    for cand in range(1, min(B, 8) + 1):
        if B % cand:
            continue
        block_bytes = cand * (C_in * L_pad + C_out * L_out) * itemsize
        if 2 * block_bytes <= vmem_budget_bytes:
            best = cand
    return best


def conv1d_relu_bn(x, weight, gamma, beta, running_mean, running_var, *,
                   bias=None, stride=1, padding=0, dilation=1, eps=1e-5,
                   block_batch=None):
    """Forward of Conv1dReluBn: bn(relu(conv1d(x))), inference-mode BatchNorm.

    x:      (B, C_in, L)
    weight: (C_out, C_in, K)   PyTorch Conv1d weight layout
    bias:   (C_out,) or None   Conv1d bias (module default: None / bias=False)
    gamma, beta, running_mean, running_var: (C_out,) BatchNorm1d parameters
    """
    B, C_in, L = x.shape
    C_out, C_in_w, K = weight.shape
    assert C_in_w == C_in, (C_in_w, C_in)
    if stride != 1:
        # TODO(synk): stride > 1 not implemented (needs strided lane slicing).
        raise NotImplementedError("stride > 1 is not supported")
    L_out = L + 2 * padding - dilation * (K - 1)
    assert L_out > 0
    L_pad = L + 2 * padding

    # HBM-level zero padding of the sequence axis (only when padding > 0).
    x_p = jnp.pad(x, ((0, 0), (0, 0), (padding, padding))) if padding else x

    # One-time parameter prep (in a real model this lives at init, not per call):
    # tap-major weight so w_ref[k] is a contiguous (C_out, C_in) MXU operand, and
    # BatchNorm folded exactly into a per-channel scale/shift.
    w_prep = jnp.transpose(weight, (2, 0, 1))                       # (K, C_out, C_in)
    scale = gamma.astype(jnp.float32) * jax.lax.rsqrt(
        running_var.astype(jnp.float32) + eps)
    shift = beta.astype(jnp.float32) - running_mean.astype(jnp.float32) * scale
    scale = scale.reshape(C_out, 1)
    shift = shift.reshape(C_out, 1)
    bias_arr = (jnp.zeros((C_out,), jnp.float32) if bias is None
                else bias.astype(jnp.float32)).reshape(C_out, 1)

    itemsize = jnp.dtype(x.dtype).itemsize
    if block_batch is None:
        block_batch = _pick_block_batch(B, C_in, C_out, L_pad, L_out, itemsize)
    assert B % block_batch == 0, (B, block_batch)
    grid = (B // block_batch,)

    kernel = functools.partial(_conv1d_relu_bn_kernel, K=K, dilation=dilation,
                               block_batch=block_batch)

    return pl.pallas_call(
        kernel,
        out_shape=jax.ShapeDtypeStruct((B, C_out, L_out), x.dtype),
        grid_spec=pltpu.PrefetchScalarGridSpec(
            num_scalar_prefetch=0,
            grid=grid,
            in_specs=[
                # Batch-tiled input: pipelined (double-buffered) across grid steps.
                pl.BlockSpec((block_batch, C_in, L_pad), lambda b: (b, 0, 0)),
                # Weights / BN params: same block every step -> stay VMEM-resident.
                pl.BlockSpec((K, C_out, C_in), lambda b: (0, 0, 0)),
                pl.BlockSpec((C_out, 1), lambda b: (0, 0)),
                pl.BlockSpec((C_out, 1), lambda b: (0, 0)),
                pl.BlockSpec((C_out, 1), lambda b: (0, 0)),
            ],
            out_specs=pl.BlockSpec((block_batch, C_out, L_out),
                                   lambda b: (b, 0, 0)),
        ),
        compiler_params=pltpu.CompilerParams(
            # Batch tiles are independent: pipeline them and shard across
            # TensorCores on megacore parts (v7x).
            dimension_semantics=("parallel",)),
    )(x_p, w_prep, bias_arr, scale, shift)


def conv1d_relu_bn_ref(x, weight, gamma, beta, running_mean, running_var, *,
                       bias=None, stride=1, padding=0, dilation=1, eps=1e-5):
    """Plain-JAX reference matching the PyTorch module (inference-mode BN)."""
    y = jax.lax.conv_general_dilated(
        x, weight,
        window_strides=(stride,),
        padding=[(padding, padding)],
        rhs_dilation=(dilation,),
        dimension_numbers=("NCH", "OIH", "NCH"),
        precision=jax.lax.Precision.HIGHEST)
    if bias is not None:
        y = y + bias[None, :, None]
    y = jnp.maximum(y, 0.0)
    inv = jax.lax.rsqrt(running_var + eps)
    return ((y - running_mean[None, :, None]) * (gamma * inv)[None, :, None]
            + beta[None, :, None])


if __name__ == "__main__":
    key = jax.random.PRNGKey(0)
    ks = jax.random.split(key, 10)

    def _q(a):
        # Quantize test data to the bf16 grid so MXU precision-pass choices do
        # not affect the comparison (bf16 products are exact in f32).
        return a.astype(jnp.bfloat16).astype(jnp.float32)

    # Config A: kernel_size=3, padding=1, dilation=1 (multi-tap path), grid of 4.
    B, C_in, C_out, L, K, pad = 8, 32, 64, 256, 3, 1
    x = _q(jax.random.normal(ks[0], (B, C_in, L), jnp.float32))
    w = _q(jax.random.normal(ks[1], (C_out, C_in, K), jnp.float32)
           / jnp.sqrt(C_in * K))
    gamma = 1.0 + 0.1 * jax.random.normal(ks[2], (C_out,), jnp.float32)
    beta = 0.1 * jax.random.normal(ks[3], (C_out,), jnp.float32)
    mean = 0.1 * jax.random.normal(ks[4], (C_out,), jnp.float32)
    var = jnp.abs(jax.random.normal(ks[5], (C_out,), jnp.float32)) + 0.5

    out = jax.block_until_ready(
        conv1d_relu_bn(x, w, gamma, beta, mean, var, padding=pad, block_batch=2))
    ref = jax.block_until_ready(
        conv1d_relu_bn_ref(x, w, gamma, beta, mean, var, padding=pad))
    assert out.shape == ref.shape == (B, C_out, L)
    assert jnp.allclose(out, ref, atol=1e-4, rtol=1e-4), \
        float(jnp.max(jnp.abs(out - ref)))

    # Config B: kernel_size=1 (module default) with a conv bias.
    B2, C2_in, C2_out, L2 = 2, 16, 16, 128
    x2 = _q(jax.random.normal(ks[6], (B2, C2_in, L2), jnp.float32))
    w2 = _q(jax.random.normal(ks[7], (C2_out, C2_in, 1), jnp.float32)
            / jnp.sqrt(C2_in))
    bias2 = _q(0.1 * jax.random.normal(ks[8], (C2_out,), jnp.float32))
    gamma2 = 1.0 + 0.1 * jax.random.normal(ks[9], (C2_out,), jnp.float32)
    beta2 = jnp.zeros((C2_out,), jnp.float32)
    mean2 = 0.05 * jnp.ones((C2_out,), jnp.float32)
    var2 = jnp.ones((C2_out,), jnp.float32)

    out2 = jax.block_until_ready(
        conv1d_relu_bn(x2, w2, gamma2, beta2, mean2, var2, bias=bias2))
    ref2 = jax.block_until_ready(
        conv1d_relu_bn_ref(x2, w2, gamma2, beta2, mean2, var2, bias=bias2))
    assert out2.shape == (B2, C2_out, L2)
    assert jnp.allclose(out2, ref2, atol=1e-4, rtol=1e-4), \
        float(jnp.max(jnp.abs(out2 - ref2)))

    print("KERNEL_OK")
</pallas_src>

<mosaic_0001>
module attributes {stable_mosaic.version = 11 : i64} {
  func.func @_conv1d_relu_bn_kernel(%arg0: i32, %arg1: memref<2x32x258xf32, #tpu.memory_space<vmem>>, %arg2: memref<3x64x32xf32, #tpu.memory_space<vmem>>, %arg3: memref<64x1xf32, #tpu.memory_space<vmem>>, %arg4: memref<64x1xf32, #tpu.memory_space<vmem>>, %arg5: memref<64x1xf32, #tpu.memory_space<vmem>>, %arg6: memref<2x64x256xf32, #tpu.memory_space<vmem>>) attributes {dimension_semantics = [#tpu.dimension_semantics<parallel>], iteration_bounds = array<i64: 4>, scalar_prefetch = 0 : i64, scratch_operands = 0 : i64, tpu.core_type = #tpu.core_type<tc>, window_params = [{transform_indices = @transform_0, window_bounds = array<i64: 2, 32, 258>}, {pipeline_mode = #tpu.pipeline_mode<synchronous>, transform_indices = @transform_1, window_bounds = array<i64: 3, 64, 32>}, {pipeline_mode = #tpu.pipeline_mode<synchronous>, transform_indices = @transform_2, window_bounds = array<i64: 64, 1>}, {pipeline_mode = #tpu.pipeline_mode<synchronous>, transform_indices = @transform_3, window_bounds = array<i64: 64, 1>}, {pipeline_mode = #tpu.pipeline_mode<synchronous>, transform_indices = @transform_4, window_bounds = array<i64: 64, 1>}, {transform_indices = @transform_5, window_bounds = array<i64: 2, 64, 256>}]} {
    %c0 = arith.constant 0 : index
    %c0_0 = arith.constant 0 : index
    %0 = vector.load %arg3[%c0, %c0_0] : memref<64x1xf32, #tpu.memory_space<vmem>>, vector<64x1xf32>
    %c0_1 = arith.constant 0 : index
    %c0_2 = arith.constant 0 : index
    %1 = vector.load %arg4[%c0_1, %c0_2] : memref<64x1xf32, #tpu.memory_space<vmem>>, vector<64x1xf32>
    %c0_3 = arith.constant 0 : index
    %c0_4 = arith.constant 0 : index
    %2 = vector.load %arg5[%c0_3, %c0_4] : memref<64x1xf32, #tpu.memory_space<vmem>>, vector<64x1xf32>
    %c0_5 = arith.constant 0 : index
    %c0_6 = arith.constant 0 : index
    %c0_7 = arith.constant 0 : index
    %3 = vector.load %arg1[%c0_5, %c0_6, %c0_7] : memref<2x32x258xf32, #tpu.memory_space<vmem>>, vector<1x32x258xf32>
    %4 = vector.shape_cast %3 : vector<1x32x258xf32> to vector<32x258xf32>
    %cst = arith.constant 0.000000e+00 : f32
    %5 = vector.broadcast %cst : f32 to vector<64x256xf32>
    %c0_8 = arith.constant 0 : index
    %c0_9 = arith.constant 0 : index
    %c0_10 = arith.constant 0 : index
    %6 = vector.load %arg2[%c0_8, %c0_9, %c0_10] : memref<3x64x32xf32, #tpu.memory_space<vmem>>, vector<1x64x32xf32>
    %7 = vector.shape_cast %6 : vector<1x64x32xf32> to vector<64x32xf32>
    %8 = vector.extract_strided_slice %4 {offsets = [0, 0], sizes = [32, 256], strides = [1, 1]} : vector<32x258xf32> to vector<32x256xf32>
    %cst_11 = arith.constant dense<0.000000e+00> : vector<64x256xf32>
    %9 = tpu.matmul %7, %8, %cst_11 {dimension_numbers = #tpu.dot_dimension_numbers<[1], [0], [0], [1], [0, 0, 1, 1], [], []>} : vector<64x32xf32>, vector<32x256xf32>, vector<64x256xf32> -> vector<64x256xf32>
    %10 = arith.addf %5, %9 : vector<64x256xf32>
    %c1 = arith.constant 1 : index
    %c0_12 = arith.constant 0 : index
    %c0_13 = arith.constant 0 : index
    %11 = vector.load %arg2[%c1, %c0_12, %c0_13] : memref<3x64x32xf32, #tpu.memory_space<vmem>>, vector<1x64x32xf32>
    %12 = vector.shape_cast %11 : vector<1x64x32xf32> to vector<64x32xf32>
    %13 = vector.extract_strided_slice %4 {offsets = [0, 1], sizes = [32, 256], strides = [1, 1]} : vector<32x258xf32> to vector<32x256xf32>
    %cst_14 = arith.constant dense<0.000000e+00> : vector<64x256xf32>
    %14 = tpu.matmul %12, %13, %cst_14 {dimension_numbers = #tpu.dot_dimension_numbers<[1], [0], [0], [1], [0, 0, 1, 1], [], []>} : vector<64x32xf32>, vector<32x256xf32>, vector<64x256xf32> -> vector<64x256xf32>
    %15 = arith.addf %10, %14 : vector<64x256xf32>
    %c2 = arith.constant 2 : index
    %c0_15 = arith.constant 0 : index
    %c0_16 = arith.constant 0 : index
    %16 = vector.load %arg2[%c2, %c0_15, %c0_16] : memref<3x64x32xf32, #tpu.memory_space<vmem>>, vector<1x64x32xf32>
    %17 = vector.shape_cast %16 : vector<1x64x32xf32> to vector<64x32xf32>
    %18 = vector.extract_strided_slice %4 {offsets = [0, 2], sizes = [32, 256], strides = [1, 1]} : vector<32x258xf32> to vector<32x256xf32>
    %cst_17 = arith.constant dense<0.000000e+00> : vector<64x256xf32>
    %19 = tpu.matmul %17, %18, %cst_17 {dimension_numbers = #tpu.dot_dimension_numbers<[1], [0], [0], [1], [0, 0, 1, 1], [], []>} : vector<64x32xf32>, vector<32x256xf32>, vector<64x256xf32> -> vector<64x256xf32>
    %20 = arith.addf %15, %19 : vector<64x256xf32>
    %21 = vector.broadcast %0 : vector<64x1xf32> to vector<64x256xf32>
    %22 = arith.addf %20, %21 : vector<64x256xf32>
    %cst_18 = arith.constant 0.000000e+00 : f32
    %23 = vector.broadcast %cst_18 : f32 to vector<64x256xf32>
    %24 = arith.maximumf %22, %23 : vector<64x256xf32>
    %25 = vector.broadcast %1 : vector<64x1xf32> to vector<64x256xf32>
    %26 = arith.mulf %24, %25 : vector<64x256xf32>
    %27 = vector.broadcast %2 : vector<64x1xf32> to vector<64x256xf32>
    %28 = arith.addf %26, %27 : vector<64x256xf32>
    %c0_19 = arith.constant 0 : index
    %c0_20 = arith.constant 0 : index
    %c0_21 = arith.constant 0 : index
    %29 = vector.load %arg6[%c0_19, %c0_20, %c0_21] : memref<2x64x256xf32, #tpu.memory_space<vmem>>, vector<1x64x256xf32>
    %30 = vector.shape_cast %29 : vector<1x64x256xf32> to vector<64x256xf32>
    %31 = vector.shape_cast %28 : vector<64x256xf32> to vector<1x64x256xf32>
    tpu.vector_store %arg6[%c0_19, %c0_20, %c0_21], %31 {strides = array<i32>} : memref<2x64x256xf32, #tpu.memory_space<vmem>>, vector<1x64x256xf32>,
    %c1_22 = arith.constant 1 : index
    %c0_23 = arith.constant 0 : index
    %c0_24 = arith.constant 0 : index
    %32 = vector.load %arg1[%c1_22, %c0_23, %c0_24] : memref<2x32x258xf32, #tpu.memory_space<vmem>>, vector<1x32x258xf32>
    %33 = vector.shape_cast %32 : vector<1x32x258xf32> to vector<32x258xf32>
    %cst_25 = arith.constant 0.000000e+00 : f32
    %34 = vector.broadcast %cst_25 : f32 to vector<64x256xf32>
    %c0_26 = arith.constant 0 : index
    %c0_27 = arith.constant 0 : index
    %c0_28 = arith.constant 0 : index
    %35 = vector.load %arg2[%c0_26, %c0_27, %c0_28] : memref<3x64x32xf32, #tpu.memory_space<vmem>>, vector<1x64x32xf32>
    %36 = vector.shape_cast %35 : vector<1x64x32xf32> to vector<64x32xf32>
    %37 = vector.extract_strided_slice %33 {offsets = [0, 0], sizes = [32, 256], strides = [1, 1]} : vector<32x258xf32> to vector<32x256xf32>
    %cst_29 = arith.constant dense<0.000000e+00> : vector<64x256xf32>
    %38 = tpu.matmul %36, %37, %cst_29 {dimension_numbers = #tpu.dot_dimension_numbers<[1], [0], [0], [1], [0, 0, 1, 1], [], []>} : vector<64x32xf32>, vector<32x256xf32>, vector<64x256xf32> -> vector<64x256xf32>
    %39 = arith.addf %34, %38 : vector<64x256xf32>
    %c1_30 = arith.constant 1 : index
    %c0_31 = arith.constant 0 : index
    %c0_32 = arith.constant 0 : index
    %40 = vector.load %arg2[%c1_30, %c0_31, %c0_32] : memref<3x64x32xf32, #tpu.memory_space<vmem>>, vector<1x64x32xf32>
    %41 = vector.shape_cast %40 : vector<1x64x32xf32> to vector<64x32xf32>
    %42 = vector.extract_strided_slice %33 {offsets = [0, 1], sizes = [32, 256], strides = [1, 1]} : vector<32x258xf32> to vector<32x256xf32>
    %cst_33 = arith.constant dense<0.000000e+00> : vector<64x256xf32>
    %43 = tpu.matmul %41, %42, %cst_33 {dimension_numbers = #tpu.dot_dimension_numbers<[1], [0], [0], [1], [0, 0, 1, 1], [], []>} : vector<64x32xf32>, vector<32x256xf32>, vector<64x256xf32> -> vector<64x256xf32>
    %44 = arith.addf %39, %43 : vector<64x256xf32>
    %c2_34 = arith.constant 2 : index
    %c0_35 = arith.constant 0 : index
    %c0_36 = arith.constant 0 : index
    %45 = vector.load %arg2[%c2_34, %c0_35, %c0_36] : memref<3x64x32xf32, #tpu.memory_space<vmem>>, vector<1x64x32xf32>
    %46 = vector.shape_cast %45 : vector<1x64x32xf32> to vector<64x32xf32>
    %47 = vector.extract_strided_slice %33 {offsets = [0, 2], sizes = [32, 256], strides = [1, 1]} : vector<32x258xf32> to vector<32x256xf32>
    %cst_37 = arith.constant dense<0.000000e+00> : vector<64x256xf32>
    %48 = tpu.matmul %46, %47, %cst_37 {dimension_numbers = #tpu.dot_dimension_numbers<[1], [0], [0], [1], [0, 0, 1, 1], [], []>} : vector<64x32xf32>, vector<32x256xf32>, vector<64x256xf32> -> vector<64x256xf32>
    %49 = arith.addf %44, %48 : vector<64x256xf32>
    %50 = vector.broadcast %0 : vector<64x1xf32> to vector<64x256xf32>
    %51 = arith.addf %49, %50 : vector<64x256xf32>
    %cst_38 = arith.constant 0.000000e+00 : f32
    %52 = vector.broadcast %cst_38 : f32 to vector<64x256xf32>
    %53 = arith.maximumf %51, %52 : vector<64x256xf32>
    %54 = vector.broadcast %1 : vector<64x1xf32> to vector<64x256xf32>
    %55 = arith.mulf %53, %54 : vector<64x256xf32>
    %56 = vector.broadcast %2 : vector<64x1xf32> to vector<64x256xf32>
    %57 = arith.addf %55, %56 : vector<64x256xf32>
    %c1_39 = arith.constant 1 : index
    %c0_40 = arith.constant 0 : index
    %c0_41 = arith.constant 0 : index
    %58 = vector.load %arg6[%c1_39, %c0_40, %c0_41] : memref<2x64x256xf32, #tpu.memory_space<vmem>>, vector<1x64x256xf32>
    %59 = vector.shape_cast %58 : vector<1x64x256xf32> to vector<64x256xf32>
    %60 = vector.shape_cast %57 : vector<64x256xf32> to vector<1x64x256xf32>
    tpu.vector_store %arg6[%c1_39, %c0_40, %c0_41], %60 {strides = array<i32>} : memref<2x64x256xf32, #tpu.memory_space<vmem>>, vector<1x64x256xf32>,
    return
  }
  func.func @transform_0(%arg0: i32) -> (i32, i32, i32) {
    %c0_i32 = arith.constant 0 : i32
    %c0_i32_0 = arith.constant 0 : i32
    %c0_i32_1 = arith.constant 0 : i32
    return %arg0, %c0_i32, %c0_i32_0 : i32, i32, i32
  }
  func.func @transform_1(%arg0: i32) -> (i32, i32, i32) {
    %c0_i32 = arith.constant 0 : i32
    %c0_i32_0 = arith.constant 0 : i32
    %c0_i32_1 = arith.constant 0 : i32
    %c0_i32_2 = arith.constant 0 : i32
    return %c0_i32, %c0_i32_0, %c0_i32_1 : i32, i32, i32
  }
  func.func @transform_2(%arg0: i32) -> (i32, i32) {
    %c0_i32 = arith.constant 0 : i32
    %c0_i32_0 = arith.constant 0 : i32
    %c0_i32_1 = arith.constant 0 : i32
    return %c0_i32, %c0_i32_0 : i32, i32
  }
  func.func @transform_3(%arg0: i32) -> (i32, i32) {
    %c0_i32 = arith.constant 0 : i32
    %c0_i32_0 = arith.constant 0 : i32
    %c0_i32_1 = arith.constant 0 : i32
    return %c0_i32, %c0_i32_0 : i32, i32
  }
  func.func @transform_4(%arg0: i32) -> (i32, i32) {
    %c0_i32 = arith.constant 0 : i32
    %c0_i32_0 = arith.constant 0 : i32
    %c0_i32_1 = arith.constant 0 : i32
    return %c0_i32, %c0_i32_0 : i32, i32
  }
  func.func @transform_5(%arg0: i32) -> (i32, i32, i32) {
    %c0_i32 = arith.constant 0 : i32
    %c0_i32_0 = arith.constant 0 : i32
    %c0_i32_1 = arith.constant 0 : i32
    return %arg0, %c0_i32, %c0_i32_0 : i32, i32, i32
  }
}

</mosaic_0001>

<bundles_post_ra>
// kernel: tpu_custom_call.1
= control target key start
LH: loop header
LB: loop body
LE: loop exit
PB: predicated region body
PF: predicated region fallthrough
CT: control target
= control target key end

     0   :  { %10 = vsyncpa [#allocation3], 0  ;;  %s2982_s0 = inlined_call_operand.hbm [shape: f32[8,32,258], index: 0, kind: input, shape index: {}]   ;;  %s2983_s1 = inlined_call_operand.vmem [shape: f32[3,64,32], index: 1, kind: input, shape index: {}]   ;;  %s2984_s2 = inlined_call_operand.vmem [shape: f32[64,1], index: 2, kind: input, shape index: {}]   ;;  %s2985_s3 = inlined_call_operand.vmem [shape: f32[64,1], index: 3, kind: input, shape index: {}]   ;;  %s2986_s4 = inlined_call_operand.vmem [shape: f32[64,1], index: 4, kind: input, shape index: {}]   ;;  %s2987_s5 = inlined_call_operand.hbm [shape: f32[8,64,256], index: 5, kind: output, shape index: {}]  }
   0x1   :  { %12 = vsyncpa [#allocation3 + $0x1], 0 }
   0x2   :  { %13 = vsyncpa [#allocation4], 0 }
   0x3   :  { %15 = vsyncpa [#allocation4 + $0x1], 0  ;;  %s2072_s18 = smov 0   ;;  %s2074_s19 = smov 0  }
   0x4   :  { %s2076_s20 = smov 0   ;;  %s2078_s21 = smov 0  }
   0x5 LB: > { %s2093_s22 = sadd.s32 4294967295, %s2030_s21   ;;  %s1755_s23 = sadd.s32 4294967294, %s2030_s21   ;;  %s2030_s21 = sphi %s2078_s21, %s3000_s21   ;;  %s2026_s20 = sphi %s2076_s20, %s2999_s20   ;;  %s2022_s19 = sphi %s2074_s19, %s2998_s19   ;;  %s2018_s18 = sphi %s2072_s18, %s2997_s18  }
   0x6   : > { %s2097_s24 = sadd.s32 1, %s2030_s21   ;;  %s28_s25 = sadd.s32 1, %s2026_s20 }
   0x7   : > { %s25_s26 = ssub.s32 %s2030_s21, %s2097_s24  ;;  %p35_p0 = scmp.ne.s32.totalorder %s2026_s20, %s2022_s19 }
   0x8   : > { %p26_p1 = scmp.eq.s32.totalorder %s25_s26, 0  ;;  %p36_p2 = scmp.eq.s32.totalorder %s2030_s21, 0 }
   0x9   : > { %p41_p3 = scmp.ne.s32.totalorder %s2022_s19, %s2018_s18  ;;  %p42_p4 = scmp.eq.s32.totalorder %s2093_s22, 0 }
   0xa   : > { %s2109_s27 = scalar_select %p26_p1, %s2026_s20, %s28_s25  }
   0xb   : > { %p37_p5 = por %p36_p2, %p35_p0  ;;  %p2111_p6 = por %p42_p4, %p41_p3 }
   0xc   : > { %p149_p7 = scmp.eq.s32.totalorder %s2093_s22, 3  ;;  %p155_p8 = scmp.eq.s32.totalorder %s1755_s23, 3 }
   0xd   : > { %s2990_s28 = scalar_select %p2111_p6, 1, 0 }
   0xe   : > { %p1894_p9 = scmp.lt.s32.totalorder %s2030_s21, 4  ;;  %p2117_p10 = por %p149_p7, %p35_p0 }
   0xf   : > { %p2121_p11 = por %p155_p8, %p41_p3  ;;  %s187_s6 = sand.u32 1, %s2026_s20  }
  0x10   : > { %s2991_s29 = scalar_select %p2117_p10, 1, 0 }
  0x11   : > { %s2992_s30 = scalar_select %p2121_p11, 1, 0 }
  0x12   : > { %s1880_s7 = smul.u32 3072, %s2030_s21  ;;  %p2132_p12 = pnand %p1894_p9, %p37_p5 }
  0x13   : > { %s1879_s8 = smul.u32 192, %s187_s6  ;;  %s2138_s15 = scalar_lea.sflag [#allocation3], %s187_s6 }
  0x14   : > { %s2130_s11 = scalar_lea.hbm %s2982_s0, %s1880_s7  ;;  %p1940_p0 = pneg %p2132_p12 }
  0x15   : > { %s191_s13 = scalar_lea.vmem [#allocation2], %s1879_s8  ;;  %s1938_s16 = scalar_lea.hbm %s2130_s11, 3072 }
  0x16   : > { %s199_s14 = sshll.u32 %s191_s13, 4  ;;  %p1939_p13 = scmp.ne.s32.totalorder %s2130_s11, %s1938_s16  ;;  %s2136_s14 = int_to_ptr.vmem [resolvable:$true] %s199_s14 }
  0x17   : > { %s1943_s25 = scalar_lea.hbm %s2982_s0, 12288  ;;  %p1944_p3 = scmp.lt.s32.totalorder %s2130_s11, %s2982_s0 }
  0x18   : > { %p1941_p1 = pnand %p1940_p0, %p1939_p13  ;;  %p1945_p4 = scmp.lt.s32.totalorder %s1943_s25, %s1938_s16 }
  0x1a   : > { %p1942_p2 = pneg %p1941_p1  ;;  %p1946_p5 = por %p1945_p4, %p1944_p3 }
  0x1c   : > { %p1947_p7 = pnand %p1946_p5, %p1942_p2 }
  0x1e   : > { %1950 = shalt.err (!%p1947_p7)
}
  0x1f   : > { %s1951_s6 = scalar_lea.vmem %s2136_s14, 3072  ;;  %s2032_s8 = smov [#allocation2]  }
  0x20   : > { %p1952_p8 = scmp.ne.s32.totalorder %s2136_s14, %s1951_s6  ;;  %s1956_s9 = sshll.u32 %s2032_s8, 4  ;;  %s1957_s9 = int_to_ptr.vmem [resolvable:$false] %s1956_s9 }
  0x21   : > { %s1958_s10 = scalar_lea.vmem %s1957_s9, 6144  ;;  %p1959_p1 = scmp.lt.s32.totalorder %s2136_s14, %s1957_s9 }
  0x22   : > { %p1954_p9 = pnand %p1952_p8, %p1940_p0  ;;  %p1960_p11 = scmp.lt.s32.totalorder %s1958_s10, %s1951_s6 }
  0x24   : > { %p1955_p13 = pneg %p1954_p9  ;;  %p1961_p10 = por %p1960_p11, %p1959_p1 }
  0x26   : > { %p1962_p6 = pnand %p1961_p10, %p1955_p13 }
  0x28   : > { %1965 = shalt.err (!%p1962_p6)
}
  0x29   : > { %s2033_s13 = smov 384   ;;  %s2034_s16 = smov 24  }
  0x2a   : > { %1889 = dma.hbm_to_vmem [thread:$0]  (!%p2132_p12), %s2130_s11, 3072, %s2136_s14, %s2138_s15, %s2033_s13, %s2033_s13, %s2034_s16  }
  0x2b   : > { %p1761_p0 = scmp.ge.s32.totalorder %s2030_s21, 1  ;;  %p207_p2 = scmp.lt.s32.totalorder %s2030_s21, 5 }
  0x2d   : > { %p208_p3 = pnand %p1761_p0, %p207_p2 }
  0x2e   : > { %s2162_s17 = sand.u32 (!%p208_p3), 1, %s2022_s19   ;;  %p2994_p6 = scmp.ne.s32.totalorder (!%p208_p3), %s2990_s28, 0 }
  0x2f   : > { %211 = sbr.rel (%p208_p3) target bundleno = 519 (0x207), region = 40  ;;  %s214_s25 = scalar_lea.sflag (!%p208_p3), [#allocation3], %s2162_s17 }
  0x30   : > { %s1881_s23 = smul.u32 (!%p208_p3), 192, %s2162_s17 }
  0x32   : > { %s2166_s26 = scalar_lea.vmem (!%p208_p3), [#allocation2], %s1881_s23 }
  0x34   : > { %2009 = dma.done.wait (%p2994_p6), %s214_s25, 3072  }
  0x35   : > { %2011 = vsyncadd (%p2994_p6), %s214_s25, 4294964224  ;;  %v280_v0 = vld [vmem:[%s2166_s26 + $0x50] sm:$0xff]  ;;  %v279_v1 = vld [vmem:[%s2166_s26 + $0x48] sm:$0xff]  ;;  %s2035_s11 = smov 127   ;;  %v2036_v11 = vmov 0.0   ;;  %vm352_vm0 = vcmask 261120  }
  0x36   : > { %331 = vrot.lane.b32.xlu0 %v280_v0, %s2035_s11  ;;  %329 = vrot.lane.b32.xlu1 %v279_v1, %s2035_s11  ;;  %v281_v2 = vld [vmem:[%s2166_s26 + $0x58] sm:$0xff]  ;;  %v276_v4 = vld [vmem:[%s2166_s26 + $0x30] sm:$0xff]  ;;  %s2037_s14 = smov 126   ;;  %v2038_v33 = vmov 0   ;;  %vm335_vm1 = vcmask 1039360   ;;  %vm660_vm2 = vcmask 1031168  }
  0x37   : > { %v277_v3 = vld [vmem:[%s2166_s26 + $0x38] sm:$0xff]  ;;  %538 = vmatprep.subr.mxu1 %v280_v0  ;;  %v278_v5 = vld [vmem:[%s2166_s26 + $0x40] sm:$0xff]  ;;  %v271_v8 = vld [vmem:[%s2166_s26 + $0x8] sm:$0xff]  ;;  %441 = vmatprep.mubr.f32.mxu0 %v2036_v11  ;;  %s1762_s10 = sshll.u32 %s2162_s17, 8  ;;  %s1878_s16 = sshll.u32 %s2093_s22, 12 }
  0x38   : > { %539 = vmatpush1.msra.mxu1 %v279_v1  ;;  %v274_v6 = vld [vmem:[%s2166_s26 + $0x20] sm:$0xff]  ;;  %v273_v7 = vld [vmem:[%s2166_s26 + $0x18] sm:$0xff]  ;;  %v275_v9 = vld [vmem:[%s2166_s26 + $0x28] sm:$0xff]  ;;  %578 = vmatprep.mubr.f32.mxu1 %v2036_v11  ;;  %s2741_s13 = scalar_lea.vmem [#allocation5], %s1762_s10  ;;  %s2935_s28 = scalar_lea.hbm %s2987_s5, %s1878_s16 }
  0x39   : > { %540 = vmatprep.subr.mxu1 %v277_v3  ;;  %v2189_v10 = vld [vmem:[%s2166_s26] sm:$0xff]  ;;  %v272_v12 = vld [vmem:[%s2166_s26 + $0x10] sm:$0xff]  ;;  %v2215_v14 = vld [vmem:[%s2983_s1 + $0x8] sm:$0xff]  ;;  %1937 = vset.pattern.permute.xlu1 %v2038_v33  ;;  %s1668_s22 = scalar_lea.sflag [#allocation4], %s2162_s17  ;;  %p2995_p11 = scmp.ne.s32.totalorder %s2991_s29, 0 }
  0x3a   : > { %333 = vrot.lane.b32.xlu0 %v281_v2, %s2035_s11  ;;  %325 = vrot.lane.b32.xlu1 %v277_v3, %s2035_s11  ;;  %v2205_v13 = vld [vmem:[%s2983_s1] sm:$0xff]  ;;  %v2223_v15 = vld [vmem:[%s2166_s26 + $0xb0] sm:$0xff]  ;;  %s2039_s15 = smov [#allocation5]  }
  0x3b   : > { %541 = vmatpush1.msra.mxu1 %v276_v4  ;;  %v2228_v16 = vld [vmem:[%s2983_s1 + $0x10] sm:$0xff]  ;;  %v1814_v17 = vld [vmem:[%s2166_s26 + $0xb8] sm:$0xff]  ;;  %v2248_v19 = vld [vmem:[%s2166_s26 + $0xa8] sm:$0xff]  ;;  %1936 = vset.pattern.permute.xlu0 %v2038_v33  ;;  %s1970_s7 = sshll.u32 %s2039_s15, 4  ;;  %s1971_s7 = int_to_ptr.vmem [resolvable:$false] %s1970_s7 }
  0x3c   : > { %542 = vmatprep.subr.mxu1 %v274_v6  ;;  %v2240_v18 = vld [vmem:[%s2983_s1 + $0x18] sm:$0xff]  ;;  %v2253_v20 = vld [vmem:[%s2983_s1 + $0x20] sm:$0xff]  ;;  %v2267_v22 = vld [vmem:[%s2983_s1 + $0x28] sm:$0xff] }
  0x3d   : > { %543 = vmatpush1.msra.mxu1 %v273_v7  ;;  %v2262_v21 = vld [vmem:[%s2166_s26 + $0x98] sm:$0xff]  ;;  %v1811_v23 = vld [vmem:[%s2166_s26 + $0xa0] sm:$0xff]  ;;  %v2279_v24 = vld [vmem:[%s2983_s1 + $0x30] sm:$0xff] }
  0x3e   : > { %327 = vrot.lane.b32.xlu0 %v278_v5, %s2035_s11  ;;  %323 = vrot.lane.b32.xlu1 %v276_v4, %s2035_s11  ;;  %v2287_v25 = vld [vmem:[%s2166_s26 + $0x90] sm:$0xff]  ;;  %v2292_v26 = vld [vmem:[%s2983_s1 + $0x38] sm:$0xff] }
  0x3f   : > { %544 = vmatprep.subr.mxu1 %v271_v8  ;;  %v2301_v27 = vld [vmem:[%s2166_s26 + $0x80] sm:$0xff]  ;;  %v1808_v28 = vld [vmem:[%s2166_s26 + $0x88] sm:$0xff]  ;;  %v2311_v29 = vld [vmem:[%s2166_s26 + $0x78] sm:$0xff] }
  0x40   : > { %545 = vmatpush1.msra.mxu1 %v2189_v10  ;;  %v2314_v30 = vld [vmem:[%s2166_s26 + $0x68] sm:$0xff]  ;;  %v1805_v31 = vld [vmem:[%s2166_s26 + $0x70] sm:$0xff]  ;;  %v2322_v32 = vld [vmem:[%s2166_s26 + $0x60] sm:$0xff]  ;;  %s1972_s26 = scalar_lea.vmem %s1971_s7, 8192 }
  0x41   : > { %1779 = vmatmul.mubr.msk.f32.vlgmr.msra.gmra.mxu1 %vm352_vm0, %v2205_v13  ;;  %v247_v34 = vld [vmem:[%s2984_s2 + $0x8] sm:$0xff]  ;;  %v248_v35 = vld [vmem:[%s2984_s2 + $0x10] sm:$0xff]  ;;  %v246_v36 = vld [vmem:[%s2984_s2] sm:$0xff] }
  0x42   : > { %321 = vrot.lane.b32.xlu1 %v275_v9, %s2035_s11  ;;  %319 = vrot.lane.b32.xlu0 %v274_v6, %s2035_s11  ;;  %v250_v37 = vld [vmem:[%s2984_s2 + $0x20] sm:$0xff]  ;;  %v249_v38 = vld [vmem:[%s2984_s2 + $0x18] sm:$0xff] }
  0x43   : > { %584 = vmatprep.mubr.f32.mxu1 %v2036_v11  ;;  %v252_v39 = vld [vmem:[%s2984_s2 + $0x30] sm:$0xff]  ;;  %v251_v40 = vld [vmem:[%s2984_s2 + $0x28] sm:$0xff]  ;;  %v254_v41 = vld [vmem:[%s2985_s3] sm:$0xff] }
  0x44   : > { %v253_v42 = vld [vmem:[%s2984_s2 + $0x38] sm:$0xff]  ;;  %v256_v43 = vld [vmem:[%s2985_s3 + $0x10] sm:$0xff]  ;;  %v255_v44 = vld [vmem:[%s2985_s3 + $0x8] sm:$0xff] }
  0x45   : > { %1780 = vmatmul.mubr.msk.f32.gmra.mxu1 %vm352_vm0, %v2215_v14  ;;  %v258_v47 = vld [vmem:[%s2985_s3 + $0x20] sm:$0xff]  ;;  %v257_v48 = vld [vmem:[%s2985_s3 + $0x18] sm:$0xff]  ;;  %v259_v52 = vld [vmem:[%s2985_s3 + $0x28] sm:$0xff] }
  0x46   : > { %317 = vrot.lane.b32.xlu0 %v273_v7, %s2035_s11  ;;  %313 = vrot.lane.b32.xlu1 %v271_v8, %s2035_s11  ;;  %v260_v54 = vld [vmem:[%s2985_s3 + $0x30] sm:$0xff]  ;;  %v261_v59 = vld [vmem:[%s2985_s3 + $0x38] sm:$0xff] }
  0x47   : > { %590 = vmatprep.mubr.f32.mxu1 %v2036_v11  ;;  %v262_v60 = vld [vmem:[%s2986_s4] sm:$0xff] }
  0x49   : > { %1781 = vmatmul.mubr.msk.f32.gmra.mxu1 %vm352_vm0, %v2228_v16 }
  0x4a   : > { %315 = vrot.lane.b32.xlu0 %v272_v12, %s2035_s11  ;;  %311 = vrot.lane.b32.xlu1 %v2189_v10, %s2035_s11 }
  0x4b   : > { %596 = vmatprep.mubr.f32.mxu1 %v2036_v11 }
  0x4d   : > { %1782 = vmatmul.mubr.msk.f32.gmra.mxu1 %vm352_vm0, %v2240_v18 }
  0x4e   : > { %656 = vrot.lane.b32.xlu0 %v280_v0, %s2037_s14  ;;  %658 = vrot.lane.b32.xlu1 %v281_v2, %s2037_s14  ;;  %v263_v0 = vld [vmem:[%s2986_s4 + $0x8] sm:$0xff] }
  0x4f   : > { %602 = vmatprep.mubr.f32.mxu1 %v2036_v11 }
  0x51   : > { %1783 = vmatmul.mubr.msk.f32.gmra.mxu1 %vm352_vm0, %v2253_v20 }
  0x52   : > { %654 = vrot.lane.b32.xlu0 %v279_v1, %s2037_s14  ;;  %650 = vrot.lane.b32.xlu1 %v277_v3, %s2037_s14  ;;  %v264_v1 = vld [vmem:[%s2986_s4 + $0x10] sm:$0xff] }
  0x53   : > { %608 = vmatprep.mubr.f32.mxu1 %v2036_v11 }
  0x55   : > { %1784 = vmatmul.mubr.msk.f32.gmra.mxu1 %vm352_vm0, %v2267_v22 }
  0x56   : > { %652 = vrot.lane.b32.xlu0 %v278_v5, %s2037_s14  ;;  %1091 = vrot.lane.b32.xlu1 %v2223_v15, %s2035_s11  ;;  %v265_v5 = vld [vmem:[%s2986_s4 + $0x18] sm:$0xff] }
  0x57   : > { %614 = vmatprep.mubr.f32.mxu1 %v2036_v11 }
  0x59   : > { %1785 = vmatmul.mubr.msk.f32.gmra.mxu1 %vm352_vm0, %v2279_v24 }
  0x5a   : > { %1093 = vrot.lane.b32.xlu0 %v1814_v17, %s2035_s11  ;;  %648 = vrot.lane.b32.xlu1 %v276_v4, %s2037_s14 }
  0x5b   : > { %620 = vmatprep.mubr.f32.mxu1 %v2036_v11 }
  0x5d   : > { %1786 = vmatmul.mubr.msk.f32.gmra.mxu1 %vm352_vm0, %v2292_v26 }
  0x5e   : > { %1089 = vrot.lane.b32.xlu0 %v2248_v19, %s2035_s11  ;;  %644 = vrot.lane.b32.xlu1 %v274_v6, %s2037_s14  ;;  %v266_v6 = vld [vmem:[%s2986_s4 + $0x20] sm:$0xff] }
  0x5f   : > { %1199 = vmatprep.mubr.f32.mxu1 %v2036_v11 }
  0x62   : > { %646 = vrot.lane.b32.xlu0 %v275_v9, %s2037_s14  ;;  %1085 = vrot.lane.b32.xlu1 %v2262_v21, %s2035_s11 }
  0x66   : > { %1087 = vrot.lane.b32.xlu0 %v1811_v23, %s2035_s11  ;;  %642 = vrot.lane.b32.xlu1 %v273_v7, %s2037_s14 }
  0x6a   : > { %1083 = vrot.lane.b32.xlu0 %v2287_v25, %s2035_s11  ;;  %638 = vrot.lane.b32.xlu1 %v271_v8, %s2037_s14 }
  0x6e   : > { %640 = vrot.lane.b32.xlu0 %v272_v12, %s2037_s14  ;;  %1079 = vrot.lane.b32.xlu1 %v2301_v27, %s2035_s11  ;;  %v2421_v12 = vld [vmem:[%s2983_s1 + $0x40] sm:$0xff] }
  0x72   : > { %1081 = vrot.lane.b32.xlu0 %v1808_v28, %s2035_s11  ;;  %636 = vrot.lane.b32.xlu1 %v2189_v10, %s2037_s14 }
  0x76   : > { %1077 = vrot.lane.b32.xlu0 %v2311_v29, %s2035_s11  ;;  %1073 = vrot.lane.b32.xlu1 %v2314_v30, %s2035_s11 }
  0x7a   : > { %1075 = vrot.lane.b32.xlu0 %v1805_v31, %s2035_s11  ;;  %1071 = vrot.lane.b32.xlu1 %v2322_v32, %s2035_s11 }
  0x7e   : > { %1413 = vrot.lane.b32.xlu0 %v2223_v15, %s2037_s14  ;;  %1415 = vrot.lane.b32.xlu1 %v1814_v17, %s2037_s14  ;;  %v267_v17 = vld [vmem:[%s2986_s4 + $0x28] sm:$0xff] }
  0x82   : > { %1411 = vrot.lane.b32.xlu0 %v2248_v19, %s2037_s14  ;;  %1407 = vrot.lane.b32.xlu1 %v2262_v21, %s2037_s14 }
  0x86   : > { %1409 = vrot.lane.b32.xlu0 %v1811_v23, %s2037_s14  ;;  %1405 = vrot.lane.b32.xlu1 %v2287_v25, %s2037_s14  ;;  %v268_v23 = vld [vmem:[%s2986_s4 + $0x30] sm:$0xff] }
  0x8a   : > { %1401 = vrot.lane.b32.xlu0 %v2301_v27, %s2037_s14  ;;  %1403 = vrot.lane.b32.xlu1 %v1808_v28, %s2037_s14 }
  0x8e   : > { %1399 = vrot.lane.b32.xlu0 %v2311_v29, %s2037_s14  ;;  %1395 = vrot.lane.b32.xlu1 %v2314_v30, %s2037_s14 }
  0x92   : > { %1397 = vrot.lane.b32.xlu0 %v1805_v31, %s2037_s14  ;;  %1393 = vrot.lane.b32.xlu1 %v2322_v32, %s2037_s14  ;;  %s1682_s14 = sshll.u32 %s2741_s13, 4  ;;  %s2937_s14 = int_to_ptr.vmem [resolvable:$true] %s1682_s14 }
  0x93   : > { %s1966_s12 = scalar_lea.vmem %s2937_s14, 4096  ;;  %p1973_p5 = scmp.lt.s32.totalorder %s2937_s14, %s1971_s7 }
  0x94   : > { %p1967_p10 = scmp.ne.s32.totalorder %s2937_s14, %s1966_s12  ;;  %p1974_p7 = scmp.lt.s32.totalorder %s1972_s26, %s1966_s12 }
  0x96   : > { %837 = vperm.xlu1 %1937, %v247_v34   ;;  %832 = vperm.xlu0 %1936, %v246_v36   ;;  %v2436_v34 = vld [vmem:[%s2983_s1 + $0x48] sm:$0xff]  ;;  %p1968_p12 = pnand %p1967_p10, %p2995_p11  ;;  %p1975_p8 = por %p1974_p7, %p1973_p5 }
  0x98   : > { %p1969_p4 = pneg %p1968_p12 }
  0x9a   : > { %842 = vperm.xlu1 %1937, %v248_v35   ;;  %847 = vperm.xlu0 %1936, %v249_v38   ;;  %v269_v35 = vld [vmem:[%s2986_s4 + $0x38] sm:$0xff]  ;;  %p1976_p9 = pnand %p1975_p8, %p1969_p4 }
  0x9e   : > { %852 = vperm.xlu1 %1937, %v250_v37   ;;  %857 = vperm.xlu0 %1936, %v251_v40  }
  0xa2   : > { %862 = vperm.xlu1 %1937, %v252_v39   ;;  %867 = vperm.xlu0 %1936, %v253_v42   ;;  %v2448_v39 = vld [vmem:[%s2983_s1 + $0x50] sm:$0xff] }
  0xa6   : > { %904 = vperm.xlu1 %1937, %v254_v41   ;;  %909 = vperm.xlu0 %1936, %v255_v44  }
  0xa8   : > { %v332_v45 = vpop.permute.xlu0 %331  ;;  %v330_v46 = vpop.permute.xlu1 %329 }
  0xa9   : > { %v342_v53 = vsel %vm335_vm1, %v330_v46, %v332_v45 }
  0xaa   : > { %914 = vperm.xlu1 %1937, %v256_v43   ;;  %919 = vperm.xlu0 %1936, %v257_v48   ;;  %v2457_v43 = vld [vmem:[%s2983_s1 + $0x58] sm:$0xff]  ;;  %v2467_v48 = vld [vmem:[%s2983_s1 + $0x60] sm:$0xff] }
  0xac   : > { %v334_v49 = vpop.permute.xlu0 %333  ;;  %v326_v50 = vpop.permute.xlu1 %325 }
  0xad   : > { %v343_v51 = vsel %vm335_vm1, %v332_v45, %v334_v49 }
  0xae   : > { %401 = vmatprep.subr.mxu0 %v343_v51  ;;  %924 = vperm.xlu1 %1937, %v258_v47  }
  0xaf   : > { %402 = vmatpush1.msra.mxu0 %v342_v53  ;;  %929 = vperm.xlu0 %1936, %v259_v52   ;;  %v2476_v52 = vld [vmem:[%s2983_s1 + $0x68] sm:$0xff] }
  0xb0   : > { %v328_v55 = vpop.permute.xlu0 %327  ;;  %v324_v56 = vpop.permute.xlu1 %323 }
  0xb1   : > { %v341_v57 = vsel %vm335_vm1, %v326_v50, %v328_v55  ;;  %v340_v58 = vsel %vm335_vm1, %v324_v56, %v326_v50  ;;  %v2485_v56 = vld [vmem:[%s2983_s1 + $0x70] sm:$0xff] }
  0xb2   : > { %403 = vmatprep.subr.mxu0 %v341_v57  ;;  %934 = vperm.xlu1 %1937, %v260_v54  }
  0xb3   : > { %404 = vmatpush1.msra.mxu0 %v340_v58  ;;  %939 = vperm.xlu0 %1936, %v261_v59  }
  0xb4   : > { %v322_v61 = vpop.permute.xlu1 %321  ;;  %v320_v62 = vpop.permute.xlu0 %319 }
  0xb5   : > { %v339_v63 = vsel %vm335_vm1, %v320_v62, %v322_v61  ;;  %v2495_v61 = vld [vmem:[%s2983_s1 + $0x78] sm:$0xff] }
  0xb6   : > { %405 = vmatprep.subr.mxu0 %v339_v63  ;;  %960 = vperm.xlu1 %1937, %v262_v60  }
  0xb7   : > { %965 = vperm.xlu0 %1936, %v263_v0  }
  0xb8   : > { %v318_v2 = vpop.permute.xlu0 %317  ;;  %v314_v3 = vpop.permute.xlu1 %313 }
  0xb9   : > { %v338_v4 = vsel %vm335_vm1, %v318_v2, %v320_v62 }
  0xba   : > { %406 = vmatpush1.msra.mxu0 %v338_v4  ;;  %970 = vperm.xlu1 %1937, %v264_v1  }
  0xbb   : > { %975 = vperm.xlu0 %1936, %v265_v5  }
  0xbc   : > { %v316_v7 = vpop.permute.xlu0 %315  ;;  %v312_v8 = vpop.permute.xlu1 %311 }
  0xbd   : > { %v337_v9 = vsel %vm335_vm1, %v314_v3, %v316_v7  ;;  %v336_v10 = vsel %vm335_vm1, %v312_v8, %v314_v3 }
  0xbe   : > { %407 = vmatprep.subr.mxu0 %v337_v9  ;;  %980 = vperm.xlu1 %1937, %v266_v6   ;;  %v2505_v6 = vld [vmem:[%s2983_s1 + $0x80] sm:$0xff] }
  0xbf   : > { %408 = vmatpush1.msra.mxu0 %v336_v10  ;;  %985 = vperm.xlu0 %1936, %v267_v17   ;;  %v2516_v17 = vld [vmem:[%s2983_s1 + $0x88] sm:$0xff] }
  0xc0   : > { %v657_v28 = vpop.permute.xlu0 %656  ;;  %v659_v31 = vpop.permute.xlu1 %658  ;;  %1771 = vmatmul.mubr.msk.f32.vlgmr.msra.gmra.mxu0 %vm352_vm0, %v2421_v12 }
  0xc1   : > { %v668_v33 = vsel %vm660_vm2, %v657_v28, %v659_v31  ;;  %447 = vmatprep.mubr.f32.mxu0 %v2036_v11 }
  0xc2   : > { %725 = vmatprep.subr.mxu0 %v668_v33  ;;  %990 = vperm.xlu1 %1937, %v268_v23  }
  0xc3   : > { %995 = vperm.xlu0 %1936, %v269_v35  }
  0xc4   : > { %v655_v36 = vpop.permute.xlu0 %654  ;;  %v651_v37 = vpop.permute.xlu1 %650  ;;  %1772 = vmatmul.mubr.msk.f32.gmra.mxu0 %vm352_vm0, %v2436_v34 }
  0xc5   : > { %v667_v38 = vsel %vm660_vm2, %v655_v36, %v657_v28  ;;  %453 = vmatprep.mubr.f32.mxu0 %v2036_v11  ;;  %v2568_v36 = vld [vmem:[%s2983_s1 + $0xa8] sm:$0xff] }
  0xc6   : > { %726 = vmatpush1.msra.mxu0 %v667_v38 }
  0xc8   : > { %v653_v40 = vpop.permute.xlu0 %652  ;;  %v1092_v41 = vpop.permute.xlu1 %1091  ;;  %1773 = vmatmul.mubr.msk.f32.gmra.mxu0 %vm352_vm0, %v2448_v39 }
  0xc9   : > { %v666_v42 = vsel %vm660_vm2, %v651_v37, %v653_v40  ;;  %459 = vmatprep.mubr.f32.mxu0 %v2036_v11 }
  0xca   : > { %727 = vmatprep.subr.mxu0 %v666_v42 }
  0xcc   : > { %v1094_v44 = vpop.permute.xlu0 %1093  ;;  %v649_v45 = vpop.permute.xlu1 %648  ;;  %1774 = vmatmul.mubr.msk.f32.gmra.mxu0 %vm352_vm0, %v2457_v43 }
  0xcd   : > { %v665_v46 = vsel %vm660_vm2, %v649_v45, %v651_v37  ;;  %v1102_v47 = vsel %vm335_vm1, %v1092_v41, %v1094_v44  ;;  %465 = vmatprep.mubr.f32.mxu0 %v2036_v11 }
  0xce   : > { %728 = vmatpush1.msra.mxu0 %v665_v46  ;;  %1159 = vmatprep.subr.mxu1 %v1102_v47 }
  0xd0   : > { %v1090_v49 = vpop.permute.xlu0 %1089  ;;  %v645_v50 = vpop.permute.xlu1 %644  ;;  %1775 = vmatmul.mubr.msk.f32.gmra.mxu0 %vm352_vm0, %v2467_v48 }
  0xd1   : > { %v1101_v51 = vsel %vm335_vm1, %v1090_v49, %v1092_v41  ;;  %471 = vmatprep.mubr.f32.mxu0 %v2036_v11 }
  0xd2   : > { %1160 = vmatpush1.msra.mxu1 %v1101_v51 }
  0xd4   : > { %v647_v53 = vpop.permute.xlu0 %646  ;;  %v1086_v54 = vpop.permute.xlu1 %1085  ;;  %1776 = vmatmul.mubr.msk.f32.gmra.mxu0 %vm352_vm0, %v2476_v52 }
  0xd5   : > { %v664_v55 = vsel %vm660_vm2, %v645_v50, %v647_v53  ;;  %477 = vmatprep.mubr.f32.mxu0 %v2036_v11 }
  0xd6   : > { %729 = vmatprep.subr.mxu0 %v664_v55 }
  0xd8   : > { %v1088_v57 = vpop.permute.xlu0 %1087  ;;  %v643_v58 = vpop.permute.xlu1 %642  ;;  %1777 = vmatmul.mubr.msk.f32.gmra.mxu0 %vm352_vm0, %v2485_v56 }
  0xd9   : > { %v663_v59 = vsel %vm660_vm2, %v643_v58, %v645_v50  ;;  %v1100_v60 = vsel %vm335_vm1, %v1086_v54, %v1088_v57  ;;  %483 = vmatprep.mubr.f32.mxu0 %v2036_v11 }
  0xda   : > { %730 = vmatpush1.msra.mxu0 %v663_v59  ;;  %1161 = vmatprep.subr.mxu1 %v1100_v60 }
  0xdc   : > { %v1084_v62 = vpop.permute.xlu0 %1083  ;;  %v639_v63 = vpop.permute.xlu1 %638  ;;  %1778 = vmatmul.mubr.msk.f32.gmra.mxu0 %vm352_vm0, %v2495_v61 }
  0xdd   : > { %v1099_v0 = vsel %vm335_vm1, %v1084_v62, %v1086_v54  ;;  %765 = vmatprep.mubr.f32.mxu0 %v2036_v11 }
  0xde   : > { %1162 = vmatpush1.msra.mxu1 %v1099_v0 }
  0xe0   : > { %v641_v1 = vpop.permute.xlu0 %640  ;;  %v1080_v2 = vpop.permute.xlu1 %1079 }
  0xe1   : > { %v662_v3 = vsel %vm660_vm2, %v639_v63, %v641_v1 }
  0xe2   : > { %731 = vmatprep.subr.mxu0 %v662_v3 }
  0xe4   : > { %v1082_v4 = vpop.permute.xlu0 %1081  ;;  %v637_v5 = vpop.permute.xlu1 %636 }
  0xe5   : > { %v661_v7 = vsel %vm660_vm2, %v637_v5, %v639_v63  ;;  %v1098_v8 = vsel %vm335_vm1, %v1080_v2, %v1082_v4 }
  0xe6   : > { %732 = vmatpush1.msra.mxu0 %v661_v7  ;;  %1163 = vmatprep.subr.mxu1 %v1098_v8 }
  0xe7   : > { %1795 = vmatmul.mubr.msk.f32.vlgmr.msra.gmra.mxu0 %vm352_vm0, %v2505_v6  ;;  %1296 = vmatprep.subr.mxu0 %v2223_v15 }
  0xe8   : > { %v1078_v9 = vpop.permute.xlu0 %1077  ;;  %v1074_v10 = vpop.permute.xlu1 %1073  ;;  %771 = vmatprep.mubr.f32.mxu0 %v2036_v11  ;;  %1297 = vmatpush1.msra.mxu0 %v2248_v19  ;;  %v2529_v19 = vld [vmem:[%s2983_s1 + $0x90] sm:$0xff] }
  0xe9   : > { %v1097_v23 = vsel %vm335_vm1, %v1078_v9, %v1080_v2  ;;  %1298 = vmatprep.subr.mxu0 %v2262_v21 }
  0xea   : > { %1164 = vmatpush1.msra.mxu1 %v1097_v23  ;;  %1299 = vmatpush1.msra.mxu0 %v2287_v25 }
  0xeb   : > { %1796 = vmatmul.mubr.msk.f32.gmra.mxu0 %vm352_vm0, %v2516_v17  ;;  %1300 = vmatprep.subr.mxu0 %v2301_v27 }
  0xec   : > { %v1076_v15 = vpop.permute.xlu0 %1075  ;;  %v1072_v28 = vpop.permute.xlu1 %1071  ;;  %777 = vmatprep.mubr.f32.mxu0 %v2036_v11  ;;  %1301 = vmatpush1.msra.mxu0 %v2311_v29  ;;  %v2544_v29 = vld [vmem:[%s2983_s1 + $0x98] sm:$0xff] }
  0xed   : > { %v1095_v21 = vsel %vm335_vm1, %v1072_v28, %v1074_v10  ;;  %v1096_v25 = vsel %vm335_vm1, %v1074_v10, %v1076_v15  ;;  %1302 = vmatprep.subr.mxu0 %v2314_v30 }
  0xee   : > { %1165 = vmatprep.subr.mxu1 %v1096_v25  ;;  %1303 = vmatpush1.msra.mxu0 %v2322_v32 }
  0xef   : > { %1797 = vmatmul.mubr.msk.f32.gmra.mxu0 %vm352_vm0, %v2529_v19  ;;  %1166 = vmatpush1.msra.mxu1 %v1095_v21 }
  0xf0   : > { %v1414_v27 = vpop.permute.xlu0 %1413  ;;  %1823 = vmatmul.mubr.msk.f32.vlgmr.msra.gmra.mxu1 %vm352_vm0, %v2421_v12  ;;  %783 = vmatprep.mubr.f32.mxu0 %v2036_v11  ;;  %v1416_v31 = vpop.permute.xlu1 %1415  ;;  %v2556_v12 = vld [vmem:[%s2983_s1 + $0xa0] sm:$0xff] }
  0xf1   : > { %1205 = vmatprep.mubr.f32.mxu1 %v2036_v11  ;;  %v1424_v30 = vsel %vm660_vm2, %v1414_v27, %v1416_v31 }
  0xf2   : > { %1481 = vmatprep.subr.mxu1 %v1424_v30 }
  0xf3   : > { %1798 = vmatmul.mubr.msk.f32.gmra.mxu0 %vm352_vm0, %v2544_v29 }
  0xf4   : > { %v1412_v32 = vpop.permute.xlu0 %1411  ;;  %1824 = vmatmul.mubr.msk.f32.gmra.mxu1 %vm352_vm0, %v2436_v34  ;;  %789 = vmatprep.mubr.f32.mxu0 %v2036_v11  ;;  %v1408_v33 = vpop.permute.xlu1 %1407 }
  0xf5   : > { %v1423_v35 = vsel %vm660_vm2, %v1412_v32, %v1414_v27  ;;  %1211 = vmatprep.mubr.f32.mxu1 %v2036_v11 }
  0xf6   : > { %1482 = vmatpush1.msra.mxu1 %v1423_v35 }
  0xf7   : > { %1799 = vmatmul.mubr.msk.f32.gmra.mxu0 %vm352_vm0, %v2556_v12 }
  0xf8   : > { %1825 = vmatmul.mubr.msk.f32.gmra.mxu1 %vm352_vm0, %v2448_v39  ;;  %795 = vmatprep.mubr.f32.mxu0 %v2036_v11  ;;  %v1410_v34 = vpop.permute.xlu0 %1409  ;;  %v1406_v37 = vpop.permute.xlu1 %1405  ;;  %v1793_v39 = vld [vmem:[%s2983_s1 + $0xb0] sm:$0xff] }
  0xf9   : > { %1217 = vmatprep.mubr.f32.mxu1 %v2036_v11  ;;  %v1421_v38 = vsel %vm660_vm2, %v1406_v37, %v1408_v33  ;;  %v1422_v40 = vsel %vm660_vm2, %v1408_v33, %v1410_v34 }
  0xfa   : > { %1483 = vmatprep.subr.mxu1 %v1422_v40 }
  0xfb   : > { %1800 = vmatmul.mubr.msk.f32.gmra.mxu0 %vm352_vm0, %v2568_v36  ;;  %1484 = vmatpush1.msra.mxu1 %v1421_v38 }
  0xfc   : > { %1826 = vmatmul.mubr.msk.f32.gmra.mxu1 %vm352_vm0, %v2457_v43  ;;  %801 = vmatprep.mubr.f32.mxu0 %v2036_v11  ;;  %v1402_v41 = vpop.permute.xlu0 %1401  ;;  %v1404_v42 = vpop.permute.xlu1 %1403  ;;  %v1794_v43 = vld [vmem:[%s2983_s1 + $0xb8] sm:$0xff] }
  0xfd   : > { %1223 = vmatprep.mubr.f32.mxu1 %v2036_v11  ;;  %v1420_v44 = vsel %vm660_vm2, %v1402_v41, %v1404_v42 }
  0xfe   : > { %1485 = vmatprep.subr.mxu1 %v1420_v44 }
  0xff   : > { %1801 = vmatmul.mubr.msk.f32.gmra.mxu0 %vm352_vm0, %v1793_v39 }
 0x100   : > { %1827 = vmatmul.mubr.msk.f32.gmra.mxu1 %vm352_vm0, %v2467_v48  ;;  %807 = vmatprep.mubr.f32.mxu0 %v2036_v11  ;;  %v1400_v45 = vpop.permute.xlu0 %1399  ;;  %v1396_v46 = vpop.permute.xlu1 %1395 }
 0x101   : > { %1229 = vmatprep.mubr.f32.mxu1 %v2036_v11  ;;  %v1419_v47 = vsel %vm660_vm2, %v1400_v45, %v1402_v41 }
 0x102   : > { %1486 = vmatpush1.msra.mxu1 %v1419_v47 }
 0x103   : > { %1802 = vmatmul.mubr.msk.f32.gmra.mxu0 %vm352_vm0, %v1794_v43 }
 0x104   : > { %1828 = vmatmul.mubr.msk.f32.gmra.mxu1 %vm352_vm0, %v2476_v52  ;;  %1336 = vmatprep.mubr.f32.mxu0 %v2036_v11  ;;  %v1398_v48 = vpop.permute.xlu0 %1397  ;;  %v1394_v49 = vpop.permute.xlu1 %1393 }
 0x105   : > { %1235 = vmatprep.mubr.f32.mxu1 %v2036_v11  ;;  %v1417_v50 = vsel %vm660_vm2, %v1394_v49, %v1396_v46  ;;  %v1418_v51 = vsel %vm660_vm2, %v1396_v46, %v1398_v48 }
 0x106   : > { %1487 = vmatprep.subr.mxu1 %v1418_v51 }
 0x107   : > { %1831 = vmatmul.mubr.msk.f32.vlgmr.msra.gmra.mxu0 %vm352_vm0, %v2205_v13  ;;  %1488 = vmatpush1.msra.mxu1 %v1417_v50  ;;  %v580_v13 = vpop.f32.mrf.mxu1 }
 0x108   : > { %1829 = vmatmul.mubr.msk.f32.gmra.mxu1 %vm352_vm0, %v2485_v56  ;;  %1342 = vmatprep.mubr.f32.mxu0 %v2036_v11 }
 0x109   : > { %1241 = vmatprep.mubr.f32.mxu1 %v2036_v11 }
 0x10b   : > { %1832 = vmatmul.mubr.msk.f32.gmra.mxu0 %vm352_vm0, %v2215_v14  ;;  %v582_v14 = vpop.f32.mrf.mxu1 }
 0x10c   : > { %1830 = vmatmul.mubr.msk.f32.gmra.mxu1 %vm352_vm0, %v2495_v61  ;;  %1348 = vmatprep.mubr.f32.mxu0 %v2036_v11 }
 0x10d   : > { %1521 = vmatprep.mubr.f32.mxu1 %v2036_v11 }
 0x10f   : > { %1833 = vmatmul.mubr.msk.f32.gmra.mxu0 %vm352_vm0, %v2228_v16  ;;  %v586_v16 = vpop.f32.mrf.mxu1 }
 0x110   : > { %1847 = vmatmul.mubr.msk.f32.vlgmr.msra.gmra.mxu1 %vm352_vm0, %v2505_v6  ;;  %1354 = vmatprep.mubr.f32.mxu0 %v2036_v11 }
 0x111   : > { %1527 = vmatprep.mubr.f32.mxu1 %v2036_v11 }
 0x113   : > { %1834 = vmatmul.mubr.msk.f32.gmra.mxu0 %vm352_vm0, %v2240_v18  ;;  %v588_v18 = vpop.f32.mrf.mxu1 }
 0x114   : > { %1848 = vmatmul.mubr.msk.f32.gmra.mxu1 %vm352_vm0, %v2516_v17  ;;  %1360 = vmatprep.mubr.f32.mxu0 %v2036_v11 }
 0x115   : > { %1533 = vmatprep.mubr.f32.mxu1 %v2036_v11 }
 0x117   : > { %1835 = vmatmul.mubr.msk.f32.gmra.mxu0 %vm352_vm0, %v2253_v20  ;;  %v2649_v20 = vpop.permute.xlu1 %837 }
 0x118   : > { %1849 = vmatmul.mubr.msk.f32.gmra.mxu1 %vm352_vm0, %v2529_v19  ;;  %1366 = vmatprep.mubr.f32.mxu0 %v2036_v11 }
 0x119   : > { %1539 = vmatprep.mubr.f32.mxu1 %v2036_v11 }
 0x11b   : > { %1836 = vmatmul.mubr.msk.f32.gmra.mxu0 %vm352_vm0, %v2267_v22  ;;  %v2653_v54 = vpop.permute.xlu1 %842 }
 0x11c   : > { %1850 = vmatmul.mubr.msk.f32.gmra.mxu1 %vm352_vm0, %v2544_v29  ;;  %1372 = vmatprep.mubr.f32.mxu0 %v2036_v11 }
 0x11d   : > { %1545 = vmatprep.mubr.f32.mxu1 %v2036_v11 }
 0x11f   : > { %1837 = vmatmul.mubr.msk.f32.gmra.mxu0 %vm352_vm0, %v2279_v24  ;;  %v2651_v24 = vpop.permute.xlu0 %832  ;;  %v2659_v60 = vpop.permute.xlu1 %852 }
 0x120   : > { %1851 = vmatmul.mubr.msk.f32.gmra.mxu1 %vm352_vm0, %v2556_v12  ;;  %1378 = vmatprep.mubr.f32.mxu0 %v2036_v11 }
 0x121   : > { %1551 = vmatprep.mubr.f32.mxu1 %v2036_v11 }
 0x123   : > { %1838 = vmatmul.mubr.msk.f32.gmra.mxu0 %vm352_vm0, %v2292_v26  ;;  %v592_v26 = vpop.f32.mrf.mxu1  ;;  %v2669_v2 = vpop.permute.xlu1 %862 }
 0x124   : > { %1852 = vmatmul.mubr.msk.f32.gmra.mxu1 %vm352_vm0, %v2568_v36 }
 0x125   : > { %1557 = vmatprep.mubr.f32.mxu1 %v2036_v11  ;;  %v2655_v55 = vpop.f32.mrf.mxu1 }
 0x127   : > { %v598_v58 = vpop.f32.mrf.mxu1  ;;  %v2683_v9 = vpop.permute.xlu1 %904 }
 0x128   : > { %1853 = vmatmul.mubr.msk.f32.gmra.mxu1 %vm352_vm0, %v1793_v39 }
 0x129   : > { %1563 = vmatprep.mubr.f32.mxu1 %v2036_v11  ;;  %v2657_v11 = vpop.permute.xlu0 %847  ;;  %v2663_v63 = vpop.f32.mrf.mxu1 }
 0x12b   : > { %v2671_v3 = vpop.f32.mrf.mxu1  ;;  %v2693_v28 = vpop.permute.xlu1 %914 }
 0x12c   : > { %1854 = vmatmul.mubr.msk.f32.gmra.mxu1 %vm352_vm0, %v1794_v43 }
 0x12d   : > { %v2661_v62 = vpop.permute.xlu0 %857  ;;  %v2679_v7 = vpop.f32.mrf.mxu1 }
 0x12f   : > { %v2689_v23 = vpop.f32.mrf.mxu1  ;;  %v2701_v27 = vpop.permute.xlu1 %924 }
 0x131   : > { %v2675_v5 = vpop.permute.xlu0 %867  ;;  %v2695_v19 = vpop.f32.mrf.mxu1 }
 0x133   : > { %v2703_v29 = vpop.f32.mrf.mxu1  ;;  %v2711_v36 = vpop.permute.xlu1 %934 }
 0x135   : > { %v2687_v17 = vpop.permute.xlu0 %909  ;;  %v2709_v12 = vpop.f32.mrf.mxu1 }
 0x137   : > { %v2714_v41 = vpop.f32.mrf.mxu1 }
 0x139   : > { %v2699_v25 = vpop.permute.xlu0 %919 }
 0x13d   : > { %v2707_v30 = vpop.permute.xlu0 %929 }
 0x141   : > { %v2716_v44 = vpop.permute.xlu0 %939 }
 0x180   : > { %v443_v22 = vpop.f32.mrf.mxu0 }
 0x181   : > { %v581_v32 = vadd.f32 %v580_v13, %v443_v22  ;;  %v2724_v22 = vpop.permute.xlu1 %960 }
 0x182   : > { %v445_v52 = vpop.f32.mrf.mxu0 }
 0x183   : > { %v583_v35 = vadd.f32 %v582_v14, %v445_v52 }
 0x184   : > { %v449_v53 = vpop.f32.mrf.mxu0 }
 0x185   : > { %v587_v38 = vadd.f32 %v586_v16, %v449_v53  ;;  %v2722_v16 = vpop.f32.mrf.mxu1 }
 0x186   : > { %v451_v56 = vpop.f32.mrf.mxu0 }
 0x187   : > { %v589_v43 = vadd.f32 %v588_v18, %v451_v56 }
 0x188   : > { %v455_v57 = vpop.f32.mrf.mxu0 }
 0x189   : > { %v593_v48 = vadd.f32 %v592_v26, %v455_v57 }
 0x18a   : > { %v457_v59 = vpop.f32.mrf.mxu0 }
 0x18b   : > { %v595_v57 = vadd.f32 %v2655_v55, %v457_v59 }
 0x18c   : > { %v461_v61 = vpop.f32.mrf.mxu0 }
 0x18e   : > { %v2665_v0 = vpop.f32.mrf.mxu0 }
 0x190   : > { %v2667_v1 = vpop.f32.mrf.mxu0 }
 0x192   : > { %v2673_v4 = vpop.f32.mrf.mxu0 }
 0x194   : > { %v2677_v6 = vpop.f32.mrf.mxu0 }
 0x196   : > { %v2681_v8 = vpop.f32.mrf.mxu0 }
 0x198   : > { %v2685_v10 = vpop.f32.mrf.mxu0 }
 0x19a   : > { %v2691_v15 = vpop.f32.mrf.mxu0 }
 0x19c   : > { %v2697_v21 = vpop.f32.mrf.mxu0 }
 0x19e   : > { %v2705_v31 = vpop.f32.mrf.mxu0 }
 0x1a7   : > { %v767_v33 = vpop.f32.mrf.mxu0 }
 0x1a8   : > { %v814_v34 = vadd.f32 %v767_v33, %v581_v32  ;;  %v599_v33 = vadd.f32 %v598_v58, %v461_v61 }
 0x1a9   : > { %v769_v37 = vpop.f32.mrf.mxu0 }
 0x1aa   : > { %v870_v40 = vadd.f32 %v2651_v24, %v814_v34  ;;  %v815_v39 = vadd.f32 %v769_v37, %v583_v35  ;;  %v2732_v37 = vpop.permute.xlu0 %965 }
 0x1ab   : > { %v773_v42 = vpop.f32.mrf.mxu0 }
 0x1ac   : > { %v886_v45 = vmax.f32 %v870_v40, 0.0  ;;  %v871_v46 = vadd.f32 %v2651_v24, %v815_v39  ;;  %v816_v47 = vadd.f32 %v773_v42, %v587_v38 }
 0x1ad   : > { %v775_v49 = vpop.f32.mrf.mxu0 }
 0x1ae   : > { %v942_v50 = vmul.f32 %v2683_v9, %v886_v45  ;;  %v887_v51 = vmax.f32 %v871_v46, 0.0  ;;  %v872_v13 = vadd.f32 %v2649_v20, %v816_v47  ;;  %v817_v14 = vadd.f32 %v775_v49, %v589_v43 }
 0x1af   : > { %v779_v52 = vpop.f32.mrf.mxu0  ;;  %v601_v45 = vadd.f32 %v2663_v63, %v2665_v0  ;;  %v605_v63 = vadd.f32 %v2671_v3, %v2667_v1 }
 0x1b0   : > { %v943_v18 = vmul.f32 %v2683_v9, %v887_v51  ;;  %v888_v53 = vmax.f32 %v872_v13, 0.0  ;;  %v873_v56 = vadd.f32 %v2649_v20, %v817_v14  ;;  %v818_v32 = vadd.f32 %v779_v52, %v593_v48  ;;  %v2728_v26 = vpop.f32.mrf.mxu1 }
 0x1b1   : > { %v998_v35 = vadd.f32 %v2724_v22, %v942_v50  ;;  %v781_v34 = vpop.f32.mrf.mxu0  ;;  %v2752_v50 = vpop.permute.xlu1 %970 }
 0x1b2   : > { %v944_v38 = vmul.f32 %v2687_v17, %v888_v53  ;;  %v889_v40 = vmax.f32 %v873_v56, 0.0  ;;  %v874_v39 = vadd.f32 %v2653_v54, %v818_v32  ;;  %v999_v42 = vadd.f32 %v2724_v22, %v943_v18  ;;  %v2737_v43 = vpop.f32.mrf.mxu1 }
 0x1b3   : > { %1014 = vst [vmem:[%s2741_s13] sm:$0xff] %v998_v35  ;;  %v819_v55 = vadd.f32 %v781_v34, %v595_v57  ;;  %v785_v58 = vpop.f32.mrf.mxu0  ;;  %v607_v53 = vadd.f32 %v2679_v7, %v2673_v4  ;;  %v611_v34 = vadd.f32 %v2689_v23, %v2677_v6 }
 0x1b4   : > { %v945_v59 = vmul.f32 %v2687_v17, %v889_v40  ;;  %v890_v61 = vmax.f32 %v874_v39, 0.0  ;;  %1015 = vst [vmem:[%s2741_s13 + $0x8] sm:$0xff] %v999_v42  ;;  %v820_v46 = vadd.f32 %v785_v58, %v599_v33  ;;  %v1000_v47 = vadd.f32 %v2732_v37, %v944_v38  ;;  %v2747_v48 = vpop.f32.mrf.mxu1 }
 0x1b5   : > { %v875_v0 = vadd.f32 %v2653_v54, %v819_v55  ;;  %v787_v49 = vpop.f32.mrf.mxu0  ;;  %v2775_v55 = vpop.permute.xlu0 %975 }
 0x1b6   : > { %v946_v51 = vmul.f32 %v2693_v28, %v890_v61  ;;  %v876_v13 = vadd.f32 %v2657_v11, %v820_v46  ;;  %v1001_v14 = vadd.f32 %v2732_v37, %v945_v59  ;;  %1016 = vst [vmem:[%s2741_s13 + $0x10] sm:$0xff] %v1000_v47  ;;  %v821_v52 = vadd.f32 %v787_v49, %v601_v45  ;;  %v2758_v18 = vpop.f32.mrf.mxu1 }
 0x1b7   : > { %v891_v1 = vmax.f32 %v875_v0, 0.0  ;;  %v791_v3 = vpop.f32.mrf.mxu0  ;;  %v617_v0 = vadd.f32 %v2703_v29, %v2685_v10 }
 0x1b8   : > { %v892_v56 = vmax.f32 %v876_v13, 0.0  ;;  %1017 = vst [vmem:[%s2741_s13 + $0x18] sm:$0xff] %v1001_v14  ;;  %v877_v32 = vadd.f32 %v2657_v11, %v821_v52  ;;  %v822_v57 = vadd.f32 %v791_v3, %v605_v63  ;;  %v1002_v33 = vadd.f32 %v2752_v50, %v946_v51  ;;  %v2765_v35 = vpop.f32.mrf.mxu1  ;;  %v2788_v13 = vpop.permute.xlu1 %980 }
 0x1b9   : > { %v947_v38 = vmul.f32 %v2693_v28, %v891_v1  ;;  %v793_v40 = vpop.f32.mrf.mxu0  ;;  %v613_v63 = vadd.f32 %v2695_v19, %v2681_v8  ;;  %v619_v8 = vadd.f32 %v2709_v12, %v2691_v15  ;;  %v2806_v12 = vpop.permute.xlu0 %985 }
 0x1ba   : > { %v948_v39 = vmul.f32 %v2699_v25, %v892_v56  ;;  %v893_v4 = vmax.f32 %v877_v32, 0.0  ;;  %v878_v7 = vadd.f32 %v2659_v60, %v822_v57  ;;  %1018 = vst [vmem:[%s2741_s13 + $0x20] sm:$0xff] %v1002_v33  ;;  %v823_v42 = vadd.f32 %v793_v40, %v607_v53  ;;  %v2773_v45 = vpop.f32.mrf.mxu1 }
 0x1bb   : > { %v1003_v58 = vadd.f32 %v2752_v50, %v947_v38  ;;  %v797_v59 = vpop.f32.mrf.mxu0 }
 0x1bc   : > { %v949_v6 = vmul.f32 %v2699_v25, %v893_v4  ;;  %v894_v23 = vmax.f32 %v878_v7, 0.0  ;;  %v879_v61 = vadd.f32 %v2659_v60, %v823_v42  ;;  %v824_v46 = vadd.f32 %v797_v59, %v611_v34  ;;  %v2780_v47 = vpop.f32.mrf.mxu1 }
 0x1bd   : > { %1019 = vst [vmem:[%s2741_s13 + $0x28] sm:$0xff] %v1003_v58  ;;  %v1004_v49 = vadd.f32 %v2775_v55, %v948_v39  ;;  %v799_v51 = vpop.f32.mrf.mxu0  ;;  %v623_v34 = vadd.f32 %v2714_v41, %v2697_v21  ;;  %v625_v58 = vadd.f32 %v2722_v16, %v2705_v31 }
 0x1be   : > { %v950_v14 = vmul.f32 %v2701_v27, %v894_v23  ;;  %v895_v52 = vmax.f32 %v879_v61, 0.0  ;;  %v880_v53 = vadd.f32 %v2661_v62, %v824_v46  ;;  %v1005_v1 = vadd.f32 %v2775_v55, %v949_v6  ;;  %v2793_v3 = vpop.f32.mrf.mxu1 }
 0x1bf   : > { %1020 = vst [vmem:[%s2741_s13 + $0x30] sm:$0xff] %v1004_v49  ;;  %v825_v10 = vadd.f32 %v799_v51, %v613_v63  ;;  %v803_v19 = vpop.f32.mrf.mxu0 }
 0x1c0   : > { %v951_v29 = vmul.f32 %v2701_v27, %v895_v52  ;;  %v896_v56 = vmax.f32 %v880_v53, 0.0  ;;  %1021 = vst [vmem:[%s2741_s13 + $0x38] sm:$0xff] %v1005_v1  ;;  %v826_v32 = vadd.f32 %v803_v19, %v617_v0  ;;  %v1006_v57 = vadd.f32 %v2788_v13, %v950_v14  ;;  %v2801_v33 = vpop.f32.mrf.mxu1  ;;  %v2827_v52 = vpop.permute.xlu1 %990 }
 0x1c1   : > { %v881_v38 = vadd.f32 %v2661_v62, %v825_v10  ;;  %v805_v15 = vpop.f32.mrf.mxu0 }
 0x1c2   : > { %v952_v40 = vmul.f32 %v2707_v30, %v896_v56  ;;  %v882_v39 = vadd.f32 %v2669_v2, %v826_v32  ;;  %v1007_v4 = vadd.f32 %v2788_v13, %v951_v29  ;;  %1022 = vst [vmem:[%s2741_s13 + $0x40] sm:$0xff] %v1006_v57  ;;  %v827_v7 = vadd.f32 %v805_v15, %v619_v8  ;;  %v2812_v42 = vpop.f32.mrf.mxu1  ;;  %v2836_v57 = vpop.permute.xlu0 %995 }
 0x1c3   : > { %v897_v21 = vmax.f32 %v881_v38, 0.0  ;;  %v809_v41 = vpop.f32.mrf.mxu0 }
 0x1c4   : > { %v898_v59 = vmax.f32 %v882_v39, 0.0  ;;  %1023 = vst [vmem:[%s2741_s13 + $0x48] sm:$0xff] %v1007_v4  ;;  %v883_v6 = vadd.f32 %v2669_v2, %v827_v7  ;;  %v828_v23 = vadd.f32 %v809_v41, %v623_v34  ;;  %v1008_v61 = vadd.f32 %v2806_v12, %v952_v40  ;;  %v2819_v46 = vpop.f32.mrf.mxu1 }
 0x1c5   : > { %v953_v63 = vmul.f32 %v2707_v30, %v897_v21  ;;  %v811_v0 = vpop.f32.mrf.mxu0 }
 0x1c6   : > { %v954_v49 = vmul.f32 %v2711_v36, %v898_v59  ;;  %v899_v51 = vmax.f32 %v883_v6, 0.0  ;;  %v884_v31 = vadd.f32 %v2675_v5, %v828_v23  ;;  %1024 = vst [vmem:[%s2741_s13 + $0x50] sm:$0xff] %v1008_v61  ;;  %v829_v16 = vadd.f32 %v811_v0, %v625_v58  ;;  %v2825_v14 = vpop.f32.mrf.mxu1 }
 0x1c7   : > { %v1009_v53 = vadd.f32 %v2806_v12, %v953_v63  ;;  %v1338_v1 = vpop.f32.mrf.mxu0 }
 0x1c8   : > { %v955_v8 = vmul.f32 %v2711_v36, %v899_v51  ;;  %v900_v10 = vmax.f32 %v884_v31, 0.0  ;;  %v885_v19 = vadd.f32 %v2675_v5, %v829_v16  ;;  %v2832_v29 = vpop.f32.mrf.mxu1  ;;  %v1010_v56 = vadd.f32 %v2827_v52, %v954_v49 }
 0x1c9   : > { %1025 = vst [vmem:[%s2741_s13 + $0x58] sm:$0xff] %v1009_v53  ;;  %v1340_v32 = vpop.f32.mrf.mxu0  ;;  %v1339_v6 = vadd.f32 %v1338_v1, %v2728_v26 }
 0x1ca   : > { %v956_v34 = vmul.f32 %v2716_v44, %v900_v10  ;;  %v901_v38 = vmax.f32 %v885_v19, 0.0  ;;  %v1011_v15 = vadd.f32 %v2827_v52, %v955_v8  ;;  %v2840_v40 = vpop.f32.mrf.mxu1  ;;  %1026 = vst [vmem:[%s2741_s13 + $0x60] sm:$0xff] %v1010_v56  ;;  %v1341_v63 = vadd.f32 %v1340_v32, %v2737_v43 }
 0x1cb   : > { %v1344_v39 = vpop.f32.mrf.mxu0 }
 0x1cc   : > { %v957_v4 = vmul.f32 %v2716_v44, %v901_v38  ;;  %1027 = vst [vmem:[%s2741_s13 + $0x68] sm:$0xff] %v1011_v15  ;;  %v1012_v7 = vadd.f32 %v2836_v57, %v956_v34  ;;  %v2846_v58 = vpop.f32.mrf.mxu1  ;;  %v1345_v31 = vadd.f32 %v1344_v39, %v2747_v48 }
 0x1cd   : > { %v1346_v21 = vpop.f32.mrf.mxu0 }
 0x1ce   : > { %v1013_v41 = vadd.f32 %v2836_v57, %v957_v4  ;;  %1028 = vst [vmem:[%s2741_s13 + $0x70] sm:$0xff] %v1012_v7  ;;  %v2850_v59 = vpop.f32.mrf.mxu1  ;;  %v1347_v19 = vadd.f32 %v1346_v21, %v2758_v18 }
 0x1cf   : > { %v1350_v23 = vpop.f32.mrf.mxu0 }
 0x1d0   : > { %1029 = vst [vmem:[%s2741_s13 + $0x78] sm:$0xff] %v1013_v41  ;;  %v1523_v61 = vpop.f32.mrf.mxu1  ;;  %v1351_v4 = vadd.f32 %v1350_v23, %v2765_v35 }
 0x1d1   : > { %v1570_v0 = vadd.f32 %v1523_v61, %v1339_v6  ;;  %v1352_v49 = vpop.f32.mrf.mxu0 }
 0x1d2   : > { %v1525_v51 = vpop.f32.mrf.mxu1  ;;  %v1353_v7 = vadd.f32 %v1352_v49, %v2773_v45 }
 0x1d3   : > { %v1586_v16 = vadd.f32 %v1570_v0, %v2651_v24  ;;  %v1571_v53 = vadd.f32 %v1525_v51, %v1341_v63  ;;  %v1356_v8 = vpop.f32.mrf.mxu0 }
 0x1d4   : > { %v1529_v10 = vpop.f32.mrf.mxu1  ;;  %v1357_v63 = vadd.f32 %v1356_v8, %v2780_v47 }
 0x1d5   : > { %v1602_v56 = vmax.f32 %v1586_v16, 0.0  ;;  %v1587_v26 = vadd.f32 %v1571_v53, %v2651_v24  ;;  %v1572_v1 = vadd.f32 %v1529_v10, %v1345_v31  ;;  %v1358_v34 = vpop.f32.mrf.mxu0 }
 0x1d6   : > { %v1531_v38 = vpop.f32.mrf.mxu1 }
 0x1d7   : > { %v1618_v43 = vmul.f32 %v1602_v56, %v2683_v9  ;;  %v1603_v32 = vmax.f32 %v1587_v26, 0.0  ;;  %v1588_v15 = vadd.f32 %v1572_v1, %v2649_v20  ;;  %v1573_v48 = vadd.f32 %v1531_v38, %v1347_v19  ;;  %v1362_v39 = vpop.f32.mrf.mxu0 }
 0x1d8   : > { %v1535_v41 = vpop.f32.mrf.mxu1  ;;  %v1363_v19 = vadd.f32 %v1362_v39, %v2801_v33 }
 0x1d9   : > { %v1634_v18 = vadd.f32 %v1618_v43, %v2724_v22  ;;  %v1619_v24 = vmul.f32 %v1603_v32, %v2683_v9  ;;  %v1604_v21 = vmax.f32 %v1588_v15, 0.0  ;;  %v1589_v6 = vadd.f32 %v1573_v48, %v2649_v20  ;;  %v1364_v61 = vpop.f32.mrf.mxu0 }
 0x1da   : > { %v1574_v0 = vadd.f32 %v1535_v41, %v1351_v4  ;;  %v1537_v51 = vpop.f32.mrf.mxu1  ;;  %v1359_v9 = vadd.f32 %v1358_v34, %v2793_v3  ;;  %v1365_v4 = vadd.f32 %v1364_v61, %v2812_v42 }
 0x1db   : > { %1855 = vst [vmem:[%s2741_s13 + $0x80] sm:$0xff] %v1634_v18  ;;  %v1635_v31 = vadd.f32 %v1619_v24, %v2724_v22  ;;  %v1620_v35 = vmul.f32 %v1604_v21, %v2687_v17  ;;  %v1605_v45 = vmax.f32 %v1589_v6, 0.0  ;;  %v1575_v23 = vadd.f32 %v1537_v51, %v1353_v7  ;;  %v1368_v49 = vpop.f32.mrf.mxu0 }
 0x1dc   : > { %v1590_v16 = vadd.f32 %v1574_v0, %v2653_v54  ;;  %v1541_v53 = vpop.f32.mrf.mxu1  ;;  %v1369_v7 = vadd.f32 %v1368_v49, %v2819_v46 }
 0x1dd   : > { %1856 = vst [vmem:[%s2741_s13 + $0x88] sm:$0xff] %v1635_v31  ;;  %v1636_v20 = vadd.f32 %v1620_v35, %v2732_v37  ;;  %v1621_v47 = vmul.f32 %v1605_v45, %v2687_v17  ;;  %v1591_v8 = vadd.f32 %v1575_v23, %v2653_v54  ;;  %v1576_v22 = vadd.f32 %v1541_v53, %v1357_v63  ;;  %v1370_v10 = vpop.f32.mrf.mxu0 }
 0x1de   : > { %v1606_v56 = vmax.f32 %v1590_v16, 0.0  ;;  %v1543_v26 = vpop.f32.mrf.mxu1 }
 0x1df   : > { %1857 = vst [vmem:[%s2741_s13 + $0x90] sm:$0xff] %v1636_v20  ;;  %v1637_v3 = vadd.f32 %v1621_v47, %v2732_v37  ;;  %v1607_v1 = vmax.f32 %v1591_v8, 0.0  ;;  %v1592_v34 = vadd.f32 %v1576_v22, %v2657_v11  ;;  %v1577_v38 = vadd.f32 %v1543_v26, %v1359_v9  ;;  %v1374_v43 = vpop.f32.mrf.mxu0 }
 0x1e0   : > { %v1622_v32 = vmul.f32 %v1606_v56, %v2693_v28  ;;  %v1547_v17 = vpop.f32.mrf.mxu1  ;;  %v1375_v51 = vadd.f32 %v1374_v43, %v2832_v29 }
 0x1e1   : > { %1858 = vst [vmem:[%s2741_s13 + $0x98] sm:$0xff] %v1637_v3  ;;  %v1623_v54 = vmul.f32 %v1607_v1, %v2693_v28  ;;  %v1608_v15 = vmax.f32 %v1592_v34, 0.0  ;;  %v1593_v33 = vadd.f32 %v1577_v38, %v2657_v11  ;;  %v1578_v48 = vadd.f32 %v1547_v17, %v1363_v19  ;;  %v1376_v39 = vpop.f32.mrf.mxu0 }
 0x1e2   : > { %v1638_v37 = vadd.f32 %v1622_v32, %v2752_v50  ;;  %v1549_v41 = vpop.f32.mrf.mxu1  ;;  %v1371_v11 = vadd.f32 %v1370_v10, %v2825_v14  ;;  %v1377_v9 = vadd.f32 %v1376_v39, %v2840_v40 }
 0x1e3   : > { %v1639_v18 = vadd.f32 %v1623_v54, %v2752_v50  ;;  %v1624_v24 = vmul.f32 %v1608_v15, %v2699_v25  ;;  %v1609_v21 = vmax.f32 %v1593_v33, 0.0  ;;  %v1594_v28 = vadd.f32 %v1578_v48, %v2659_v60  ;;  %v1380_v61 = vpop.f32.mrf.mxu0 }
 0x1e4   : > { %1859 = vst [vmem:[%s2741_s13 + $0xa0] sm:$0xff] %v1638_v37  ;;  %v1579_v6 = vadd.f32 %v1549_v41, %v1365_v4  ;;  %v1553_v63 = vpop.f32.mrf.mxu1  ;;  %v1381_v26 = vadd.f32 %v1380_v61, %v2846_v58 }
 0x1e5   : > { %1860 = vst [vmem:[%s2741_s13 + $0xa8] sm:$0xff] %v1639_v18  ;;  %v1640_v0 = vadd.f32 %v1624_v24, %v2775_v55  ;;  %v1625_v42 = vmul.f32 %v1609_v21, %v2699_v25  ;;  %v1610_v46 = vmax.f32 %v1594_v28, 0.0  ;;  %v1580_v50 = vadd.f32 %v1553_v63, %v1369_v7  ;;  %v1382_v20 = vpop.f32.mrf.mxu0 }
 0x1e6   : > { %v1595_v31 = vadd.f32 %v1579_v6, %v2659_v60  ;;  %v1555_v35 = vpop.f32.mrf.mxu1 }
 0x1e7   : > { %1861 = vst [vmem:[%s2741_s13 + $0xb0] sm:$0xff] %v1640_v0  ;;  %v1641_v14 = vadd.f32 %v1625_v42, %v2775_v55  ;;  %v1626_v45 = vmul.f32 %v1610_v46, %v2701_v27  ;;  %v1596_v23 = vadd.f32 %v1580_v50, %v2661_v62  ;;  %v1581_v49 = vadd.f32 %v1555_v35, %v1371_v11 }
 0x1e8   : > { %v1611_v25 = vmax.f32 %v1595_v31, 0.0  ;;  %v1559_v16 = vpop.f32.mrf.mxu1 }
 0x1e9   : > { %1862 = vst [vmem:[%s2741_s13 + $0xb8] sm:$0xff] %v1641_v14  ;;  %v1642_v53 = vadd.f32 %v1626_v45, %v2788_v13  ;;  %v1612_v29 = vmax.f32 %v1596_v23, 0.0  ;;  %v1597_v60 = vadd.f32 %v1581_v49, %v2661_v62  ;;  %v1582_v47 = vadd.f32 %v1559_v16, %v1375_v51 }
 0x1ea   : > { %v1627_v55 = vmul.f32 %v1611_v25, %v2701_v27  ;;  %v1561_v8 = vpop.f32.mrf.mxu1  ;;  %v1383_v62 = vadd.f32 %v1382_v20, %v2850_v59 }
 0x1eb   : > { %1863 = vst [vmem:[%s2741_s13 + $0xc0] sm:$0xff] %v1642_v53  ;;  %v1628_v22 = vmul.f32 %v1612_v29, %v2707_v30  ;;  %v1613_v10 = vmax.f32 %v1597_v60, 0.0  ;;  %v1598_v40 = vadd.f32 %v1582_v47, %v2669_v2  ;;  %v1583_v19 = vadd.f32 %v1561_v8, %v1377_v9 }
 0x1ec   : > { %v1643_v56 = vadd.f32 %v1627_v55, %v2788_v13  ;;  %v1565_v3 = vpop.f32.mrf.mxu1 }
 0x1ed   : > { %v1644_v1 = vadd.f32 %v1628_v22, %v2806_v12  ;;  %v1629_v27 = vmul.f32 %v1613_v10, %v2707_v30  ;;  %v1614_v34 = vmax.f32 %v1598_v40, 0.0  ;;  %v1599_v38 = vadd.f32 %v1583_v19, %v2669_v2 }
 0x1ee   : > { %1864 = vst [vmem:[%s2741_s13 + $0xc8] sm:$0xff] %v1643_v56  ;;  %v1584_v43 = vadd.f32 %v1565_v3, %v1381_v26  ;;  %v1567_v32 = vpop.f32.mrf.mxu1 }
 0x1ef   : > { %1865 = vst [vmem:[%s2741_s13 + $0xd0] sm:$0xff] %v1644_v1  ;;  %v1645_v13 = vadd.f32 %v1629_v27, %v2806_v12  ;;  %v1630_v58 = vmul.f32 %v1614_v34, %v2711_v36  ;;  %v1615_v59 = vmax.f32 %v1599_v38, 0.0  ;;  %v1585_v17 = vadd.f32 %v1567_v32, %v1383_v62 }
 0x1f0   : > { %v1600_v54 = vadd.f32 %v1584_v43, %v2675_v5 }
 0x1f1   : > { %1866 = vst [vmem:[%s2741_s13 + $0xd8] sm:$0xff] %v1645_v13  ;;  %v1646_v30 = vadd.f32 %v1630_v58, %v2827_v52  ;;  %v1631_v2 = vmul.f32 %v1615_v59, %v2711_v36  ;;  %v1601_v15 = vadd.f32 %v1585_v17, %v2675_v5 }
 0x1f2   : > { %v1616_v33 = vmax.f32 %v1600_v54, 0.0 }
 0x1f3   : > { %1867 = vst [vmem:[%s2741_s13 + $0xe0] sm:$0xff] %v1646_v30  ;;  %v1647_v12 = vadd.f32 %v1631_v2, %v2827_v52  ;;  %v1617_v48 = vmax.f32 %v1601_v15, 0.0 }
 0x1f4   : > { %v1632_v39 = vmul.f32 %v1616_v33, %v2716_v44 }
 0x1f5   : > { %1868 = vst [vmem:[%s2741_s13 + $0xe8] sm:$0xff] %v1647_v12  ;;  %v1633_v37 = vmul.f32 %v1617_v48, %v2716_v44 }
 0x1f6   : > { %v1648_v4 = vadd.f32 %v1632_v39, %v2836_v57 }
 0x1f7   : > { %v1649_v5 = vadd.f32 %v1633_v37, %v2836_v57 }
 0x1f8   : > { %1869 = vst [vmem:[%s2741_s13 + $0xf0] sm:$0xff] %v1648_v4 }
 0x1f9   : > { %1870 = vst [vmem:[%s2741_s13 + $0xf8] sm:$0xff] %v1649_v5 }
 0x1fa   : > { %1979 = shalt.err (!%p1976_p9)
}
 0x1fb   : > { %s1980_s11 = scalar_lea.hbm %s2935_s28, 4096  ;;  %s1984_s9 = scalar_lea.hbm %s2987_s5, 16384 }
 0x1fc   : > { %p1981_p13 = scmp.ne.s32.totalorder %s2935_s28, %s1980_s11  ;;  %p1985_p2 = scmp.lt.s32.totalorder %s2935_s28, %s2987_s5 }
 0x1fd   : > { %p1986_p3 = scmp.lt.s32.totalorder %s1984_s9, %s1980_s11 }
 0x1fe   : > { %p1982_p1 = pnand %p1981_p13, %p2995_p11 }
 0x1ff   : > { %p1987_p6 = por %p1986_p3, %p1985_p2 }
 0x200   : > { %p1983_p0 = pneg %p1982_p1 }
 0x202   : > { %p1988_p10 = pnand %p1987_p6, %p1983_p0 }
 0x204   : > { %1991 = shalt.err (!%p1988_p10)
}
 0x205   : > { %s2040_s16 = smov 256   ;;  %s2041_s23 = smov 16  }
 0x206   : > { %1884 = dma.vmem_to_hbm [thread:$0]  (%p2995_p11), %s2937_s14, 4096, %s2935_s28, %s1668_s22, %s2040_s16, %s2040_s16, %s2041_s23  }
 0x207 PF: > { %p1895_p12 = scmp.ge.s32.totalorder %s2030_s21, 2  ;;  %s1697_s25 = sand.u32 1, %s2018_s18  }
 0x208   : > { %p2996_p4 = scmp.ne.s32.totalorder %s2992_s30, 0  ;;  %s1698_s12 = scalar_lea.sflag [#allocation4], %s1697_s25 }
 0x20a   : > { %p1891_p5 = pnand %p1895_p12, %p2996_p4 }
 0x20c   : > { %p1892_p7 = pneg %p1891_p5 }
 0x20e   : > { %2013 = dma.done.wait (%p1892_p7), %s1698_s12, 4096  }
 0x20f   : > { %2015 = vsyncadd (%p1892_p7), %s1698_s12, 4294963200  ;;  %p18_p8 = scmp.ge.s32.totalorder %s2097_s24, 6   ;;  %s2997_s18 = smov %s2022_s19 }
 0x210   : > { %s2998_s19 = smov %s2026_s20  ;;  %s2999_s20 = smov %s2109_s27 }
 0x211   : > { %s3000_s21 = smov %s2097_s24  ;;  %20 = sbr.rel (!%p18_p8) target bundleno = 5 (0x5), region = 89 }
 0x216   :  { %1703 = vsyncpa [#allocation3], 1 }
 0x217   :  { %1705 = vsyncpa [#allocation3 + $0x1], 1 }
 0x218   :  { %1706 = vsyncpa [#allocation4], 1 }
 0x219   :  { %1708 = vsyncpa [#allocation4 + $0x1], 1 }

</bundles_post_ra>
